<compile_context>
chip_gen: v7x
topology: tpu7x:2x2x1
jax: 0.10.0
libtpu: 0.0.40
codegen_flags: <defaults>
</compile_context>

<pallas_src>
import functools
import math

import jax
import jax.numpy as jnp
from jax import lax
from jax.experimental import pallas as pl
from jax.experimental.pallas import tpu as pltpu


# ----------------------------------------------------------------------------
# Kernel 1: token embedding gather (embed_tokens(input_ids))
# ----------------------------------------------------------------------------
def _embed_gather_kernel(ids_ref, emb_hbm, o_ref, sems):
    # ids_ref : (tokens,) int32 in SMEM (scalar prefetch)
    # emb_hbm : (vocab, d_model) ref left in HBM (memory_space=pl.ANY)
    # o_ref   : (TOK, d_model) VMEM output tile -- DMA destination (no staging buffer)
    # sems    : (TOK,) DMA semaphores
    tok = o_ref.shape[0]
    base = pl.program_id(0) * tok

    # Hoist every SMEM id read above the first .wait() (wait breaks sst->sld forwarding).
    rows = [ids_ref[base + t] for t in range(tok)]

    # Issue all row DMAs straight into the output tile, keep the handles, then wait.
    copies = []
    for t in range(tok):
        cp = pltpu.make_async_copy(emb_hbm.at[pl.ds(rows[t], 1), :],
                                   o_ref.at[pl.ds(t, 1), :],
                                   sems.at[t])
        cp.start()
        copies.append(cp)
    for cp in copies:
        cp.wait()


# ----------------------------------------------------------------------------
# Kernel 2: relative position bias + extended attention mask
# ----------------------------------------------------------------------------
def _position_bias_kernel(mask_ref, table_ref, o_ref, bucket_ref, vals_ref, *,
                          num_buckets, max_distance):
    # mask_ref   : (1, seq_k) VMEM   -- attention-mask row of the current batch element
    # table_ref  : (n_heads, num_buckets) f32 in SMEM (scalar-indexed reads)
    # o_ref      : (tq, seq_k) VMEM output tile for (batch b, head h, q-tile qi)
    # bucket_ref : (tq, seq_k) int32 VMEM scratch -- head/batch independent, per q-tile
    # vals_ref   : (tq, seq_k) f32   VMEM scratch -- per-(q-tile, head), reused over batch
    qi = pl.program_id(0)
    h = pl.program_id(1)
    b = pl.program_id(2)
    tq, seq_k = vals_ref.shape

    @pl.when(jnp.logical_and(h == 0, b == 0))
    def _():
        # T5 bidirectional relative-position bucketing (encoder: is_decoder=False).
        # Computed once per query tile; reused across all heads and batch elements.
        ctx = qi * tq + lax.broadcasted_iota(jnp.int32, (tq, seq_k), 0)  # query position
        mem = lax.broadcasted_iota(jnp.int32, (tq, seq_k), 1)            # key position
        rel = mem - ctx
        half = num_buckets // 2
        max_exact = half // 2
        bucket = jnp.where(rel > 0, half, 0).astype(jnp.int32)
        arel = jnp.abs(rel)
        is_small = arel < max_exact
        # Clamp before the log: the rel==0 / small entries are masked by `is_small`.
        arel_f = jnp.maximum(arel.astype(jnp.float32), 1.0)
        large = max_exact + (jnp.log(arel_f / max_exact)
                             / math.log(max_distance / max_exact)
                             * (half - max_exact)).astype(jnp.int32)
        large = jnp.minimum(large, half - 1)
        bucket_ref[...] = bucket + jnp.where(is_small, arel, large)

    @pl.when(b == 0)
    def _():
        # Tiny (num_buckets) table: select-sum instead of a dynamic gather.
        bucket = bucket_ref[...]
        vals = jnp.zeros((tq, seq_k), jnp.float32)
        for bk in range(num_buckets):
            vals = vals + jnp.where(bucket == bk, table_ref[h, bk], 0.0)
        vals_ref[...] = vals

    ext = (1.0 - mask_ref[...].astype(jnp.float32)) * -1e9              # (1, seq_k)
    o_ref[...] = (vals_ref[...] + ext).astype(o_ref.dtype)


# ----------------------------------------------------------------------------
# Tile pickers (avoid padding, keep blocks (8,128)-friendly, bound VMEM use)
# ----------------------------------------------------------------------------
def _pick_token_tile(total, target):
    """Largest divisor of `total` that is a multiple of 8 and <= target (else pad)."""
    if total <= target:
        return total, 0                      # single step, block == full dim
    for t in range(target, 7, -1):
        if t % 8 == 0 and total % t == 0:
            return t, 0
    pad = (-total) % target
    return target, pad                       # rare fallback: padded gather


def _pick_q_tile(seq, target=256):
    """Query-tile size for kernel 2: keeps VMEM independent of seq**2."""
    if seq <= target:
        return seq
    for t in range(target, 7, -1):
        if t % 8 == 0 and seq % t == 0:
            return t
    return seq


# ----------------------------------------------------------------------------
# Wrapper
# ----------------------------------------------------------------------------
def encoder_token_embeddings(input_ids, attention_mask, embed_weight,
                             rel_bias_weight, *, num_buckets=32,
                             max_distance=128, tok_per_step=64, q_tile=256):
    """input_ids/attention_mask: (batch, seq); embed_weight: (vocab, d_model);
    rel_bias_weight: (num_buckets, n_heads) (PyTorch nn.Embedding layout)."""
    batch, seq = input_ids.shape
    vocab, d_model = embed_weight.shape
    n_heads = rel_bias_weight.shape[1]

    # ---- Kernel 1: embedding gather ------------------------------------------------
    tokens = batch * seq
    tok, pad = _pick_token_tile(tokens, tok_per_step)
    ids_flat = input_ids.reshape(tokens).astype(jnp.int32)
    if pad:
        ids_flat = jnp.concatenate([ids_flat, jnp.zeros((pad,), jnp.int32)])
    num_steps = (tokens + pad) // tok

    hidden2d = pl.pallas_call(
        _embed_gather_kernel,
        out_shape=jax.ShapeDtypeStruct((tokens + pad, d_model), embed_weight.dtype),
        grid_spec=pltpu.PrefetchScalarGridSpec(
            num_scalar_prefetch=1,
            grid=(num_steps,),
            in_specs=[pl.BlockSpec(memory_space=pl.ANY)],   # vocab table stays in HBM
            out_specs=pl.BlockSpec((tok, d_model), lambda i, ids: (i, 0)),
            scratch_shapes=[pltpu.SemaphoreType.DMA((tok,))]),
        compiler_params=pltpu.CompilerParams(
            dimension_semantics=("parallel",)),
    )(ids_flat, embed_weight)
    if pad:
        hidden2d = hidden2d[:tokens]
    hidden = hidden2d.reshape(batch, seq, d_model)

    # ---- Kernel 2: position bias ---------------------------------------------------
    mask3d = attention_mask.reshape(batch, 1, seq).astype(jnp.float32)
    # Tiny (num_buckets, n_heads) table -> transpose once so rows are per-head in SMEM.
    table_hm = jnp.asarray(rel_bias_weight, jnp.float32).T          # (n_heads, num_buckets)

    tq = _pick_q_tile(seq, q_tile)
    n_q_tiles = seq // tq

    kernel = functools.partial(_position_bias_kernel,
                               num_buckets=num_buckets,
                               max_distance=max_distance)
    bias = pl.pallas_call(
        kernel,
        out_shape=jax.ShapeDtypeStruct((batch, n_heads, seq, seq), jnp.float32),
        grid_spec=pltpu.PrefetchScalarGridSpec(
            num_scalar_prefetch=0,
            grid=(n_q_tiles, n_heads, batch),                        # batch last -> scratch reuse
            in_specs=[
                pl.BlockSpec((None, 1, seq), lambda qi, h, b: (b, 0, 0)),
                pl.BlockSpec(memory_space=pltpu.MemorySpace.SMEM),
            ],
            out_specs=pl.BlockSpec((None, None, tq, seq),
                                   lambda qi, h, b: (b, h, qi, 0)),
            scratch_shapes=[pltpu.VMEM((tq, seq), jnp.int32),        # bucket (per q-tile)
                            pltpu.VMEM((tq, seq), jnp.float32)]),    # per-head bias values
        compiler_params=pltpu.CompilerParams(
            # q-tile axis is safe to shard across cores; head/batch axes reuse scratch
            # computed at h==0 / b==0, so they must stay sequential per core.
            dimension_semantics=("parallel", "arbitrary", "arbitrary")),
    )(mask3d, table_hm)

    return hidden, bias


# ----------------------------------------------------------------------------
# Pure-JAX reference (mirrors the PyTorch module)
# ----------------------------------------------------------------------------
def _reference(input_ids, attention_mask, embed_weight, rel_bias_weight,
               num_buckets=32, max_distance=128):
    batch, seq = input_ids.shape
    hidden = embed_weight[input_ids]                                # (B, S, D)

    ctx = jnp.arange(seq, dtype=jnp.int32)[:, None]
    mem = jnp.arange(seq, dtype=jnp.int32)[None, :]
    rel = mem - ctx
    half = num_buckets // 2
    max_exact = half // 2
    buckets = jnp.where(rel > 0, half, 0).astype(jnp.int32)
    arel = jnp.abs(rel)
    is_small = arel < max_exact
    arel_f = jnp.maximum(arel.astype(jnp.float32), 1.0)
    large = max_exact + (jnp.log(arel_f / max_exact)
                         / math.log(max_distance / max_exact)
                         * (half - max_exact)).astype(jnp.int32)
    large = jnp.minimum(large, half - 1)
    buckets = buckets + jnp.where(is_small, arel, large)

    values = rel_bias_weight[buckets]                               # (S, S, H)
    values = jnp.transpose(values, (2, 0, 1))[None]                 # (1, H, S, S)
    ext = (1.0 - attention_mask.astype(jnp.float32))[:, None, None, :] * -1e9
    return hidden, values + ext


if __name__ == "__main__":
    # Small config: batch=2, seq=16, vocab=64, d_model=128, heads=8, buckets=32.
    batch, seq = 2, 16
    vocab, d_model = 64, 128
    n_heads, num_buckets, max_distance = 8, 32, 128

    key = jax.random.PRNGKey(0)
    k_ids, k_emb, k_bias = jax.random.split(key, 3)

    input_ids = jax.random.randint(k_ids, (batch, seq), 0, vocab, dtype=jnp.int32)
    embed_weight = jax.random.normal(k_emb, (vocab, d_model), dtype=jnp.float32)
    rel_bias_weight = 0.1 * jax.random.normal(k_bias, (num_buckets, n_heads),
                                              dtype=jnp.float32)
    # Attention mask: all ones except a padded tail on the second sequence.
    attention_mask = jnp.ones((batch, seq), dtype=jnp.float32)
    attention_mask = attention_mask.at[1, seq - 4:].set(0.0)

    hidden, bias = encoder_token_embeddings(
        input_ids, attention_mask, embed_weight, rel_bias_weight,
        num_buckets=num_buckets, max_distance=max_distance)
    hidden, bias = jax.block_until_ready((hidden, bias))

    ref_hidden, ref_bias = _reference(
        input_ids, attention_mask, embed_weight, rel_bias_weight,
        num_buckets=num_buckets, max_distance=max_distance)

    assert hidden.shape == (batch, seq, d_model)
    assert bias.shape == (batch, n_heads, seq, seq)
    assert jnp.allclose(hidden, ref_hidden, atol=1e-6, rtol=1e-6), "hidden mismatch"
    assert jnp.allclose(bias, ref_bias, atol=1e-3, rtol=1e-6), "bias mismatch"

    print("KERNEL_OK")
</pallas_src>

<mosaic_0001>
module attributes {stable_mosaic.version = 11 : i64} {
  func.func @_embed_gather_kernel(%arg0: i32, %arg1: memref<32xi32, #tpu.memory_space<smem>>, %arg2: memref<64x128xf32, #tpu.memory_space<any>>, %arg3: memref<32x128xf32, #tpu.memory_space<vmem>>, %arg4: memref<32x!tpu.dma_semaphore, #tpu.memory_space<semaphore_mem>>) attributes {dimension_semantics = [#tpu.dimension_semantics<parallel>], iteration_bounds = array<i64: 1>, scalar_prefetch = 1 : i64, scratch_operands = 1 : i64, tpu.core_type = #tpu.core_type<tc>, window_params = [{}, {transform_indices = @transform_1, window_bounds = array<i64: 32, 128>}]} {
    %c32_i32 = arith.constant 32 : i32
    %0 = arith.muli %arg0, %c32_i32 : i32
    %c0_i32 = arith.constant 0 : i32
    %1 = arith.addi %0, %c0_i32 : i32
    %2 = arith.index_cast %1 : i32 to index
    %3 = memref.load %arg1[%2] : memref<32xi32, #tpu.memory_space<smem>>
    %c1_i32 = arith.constant 1 : i32
    %4 = arith.addi %0, %c1_i32 : i32
    %5 = arith.index_cast %4 : i32 to index
    %6 = memref.load %arg1[%5] : memref<32xi32, #tpu.memory_space<smem>>
    %c2_i32 = arith.constant 2 : i32
    %7 = arith.addi %0, %c2_i32 : i32
    %8 = arith.index_cast %7 : i32 to index
    %9 = memref.load %arg1[%8] : memref<32xi32, #tpu.memory_space<smem>>
    %c3_i32 = arith.constant 3 : i32
    %10 = arith.addi %0, %c3_i32 : i32
    %11 = arith.index_cast %10 : i32 to index
    %12 = memref.load %arg1[%11] : memref<32xi32, #tpu.memory_space<smem>>
    %c4_i32 = arith.constant 4 : i32
    %13 = arith.addi %0, %c4_i32 : i32
    %14 = arith.index_cast %13 : i32 to index
    %15 = memref.load %arg1[%14] : memref<32xi32, #tpu.memory_space<smem>>
    %c5_i32 = arith.constant 5 : i32
    %16 = arith.addi %0, %c5_i32 : i32
    %17 = arith.index_cast %16 : i32 to index
    %18 = memref.load %arg1[%17] : memref<32xi32, #tpu.memory_space<smem>>
    %c6_i32 = arith.constant 6 : i32
    %19 = arith.addi %0, %c6_i32 : i32
    %20 = arith.index_cast %19 : i32 to index
    %21 = memref.load %arg1[%20] : memref<32xi32, #tpu.memory_space<smem>>
    %c7_i32 = arith.constant 7 : i32
    %22 = arith.addi %0, %c7_i32 : i32
    %23 = arith.index_cast %22 : i32 to index
    %24 = memref.load %arg1[%23] : memref<32xi32, #tpu.memory_space<smem>>
    %c8_i32 = arith.constant 8 : i32
    %25 = arith.addi %0, %c8_i32 : i32
    %26 = arith.index_cast %25 : i32 to index
    %27 = memref.load %arg1[%26] : memref<32xi32, #tpu.memory_space<smem>>
    %c9_i32 = arith.constant 9 : i32
    %28 = arith.addi %0, %c9_i32 : i32
    %29 = arith.index_cast %28 : i32 to index
    %30 = memref.load %arg1[%29] : memref<32xi32, #tpu.memory_space<smem>>
    %c10_i32 = arith.constant 10 : i32
    %31 = arith.addi %0, %c10_i32 : i32
    %32 = arith.index_cast %31 : i32 to index
    %33 = memref.load %arg1[%32] : memref<32xi32, #tpu.memory_space<smem>>
    %c11_i32 = arith.constant 11 : i32
    %34 = arith.addi %0, %c11_i32 : i32
    %35 = arith.index_cast %34 : i32 to index
    %36 = memref.load %arg1[%35] : memref<32xi32, #tpu.memory_space<smem>>
    %c12_i32 = arith.constant 12 : i32
    %37 = arith.addi %0, %c12_i32 : i32
    %38 = arith.index_cast %37 : i32 to index
    %39 = memref.load %arg1[%38] : memref<32xi32, #tpu.memory_space<smem>>
    %c13_i32 = arith.constant 13 : i32
    %40 = arith.addi %0, %c13_i32 : i32
    %41 = arith.index_cast %40 : i32 to index
    %42 = memref.load %arg1[%41] : memref<32xi32, #tpu.memory_space<smem>>
    %c14_i32 = arith.constant 14 : i32
    %43 = arith.addi %0, %c14_i32 : i32
    %44 = arith.index_cast %43 : i32 to index
    %45 = memref.load %arg1[%44] : memref<32xi32, #tpu.memory_space<smem>>
    %c15_i32 = arith.constant 15 : i32
    %46 = arith.addi %0, %c15_i32 : i32
    %47 = arith.index_cast %46 : i32 to index
    %48 = memref.load %arg1[%47] : memref<32xi32, #tpu.memory_space<smem>>
    %c16_i32 = arith.constant 16 : i32
    %49 = arith.addi %0, %c16_i32 : i32
    %50 = arith.index_cast %49 : i32 to index
    %51 = memref.load %arg1[%50] : memref<32xi32, #tpu.memory_space<smem>>
    %c17_i32 = arith.constant 17 : i32
    %52 = arith.addi %0, %c17_i32 : i32
    %53 = arith.index_cast %52 : i32 to index
    %54 = memref.load %arg1[%53] : memref<32xi32, #tpu.memory_space<smem>>
    %c18_i32 = arith.constant 18 : i32
    %55 = arith.addi %0, %c18_i32 : i32
    %56 = arith.index_cast %55 : i32 to index
    %57 = memref.load %arg1[%56] : memref<32xi32, #tpu.memory_space<smem>>
    %c19_i32 = arith.constant 19 : i32
    %58 = arith.addi %0, %c19_i32 : i32
    %59 = arith.index_cast %58 : i32 to index
    %60 = memref.load %arg1[%59] : memref<32xi32, #tpu.memory_space<smem>>
    %c20_i32 = arith.constant 20 : i32
    %61 = arith.addi %0, %c20_i32 : i32
    %62 = arith.index_cast %61 : i32 to index
    %63 = memref.load %arg1[%62] : memref<32xi32, #tpu.memory_space<smem>>
    %c21_i32 = arith.constant 21 : i32
    %64 = arith.addi %0, %c21_i32 : i32
    %65 = arith.index_cast %64 : i32 to index
    %66 = memref.load %arg1[%65] : memref<32xi32, #tpu.memory_space<smem>>
    %c22_i32 = arith.constant 22 : i32
    %67 = arith.addi %0, %c22_i32 : i32
    %68 = arith.index_cast %67 : i32 to index
    %69 = memref.load %arg1[%68] : memref<32xi32, #tpu.memory_space<smem>>
    %c23_i32 = arith.constant 23 : i32
    %70 = arith.addi %0, %c23_i32 : i32
    %71 = arith.index_cast %70 : i32 to index
    %72 = memref.load %arg1[%71] : memref<32xi32, #tpu.memory_space<smem>>
    %c24_i32 = arith.constant 24 : i32
    %73 = arith.addi %0, %c24_i32 : i32
    %74 = arith.index_cast %73 : i32 to index
    %75 = memref.load %arg1[%74] : memref<32xi32, #tpu.memory_space<smem>>
    %c25_i32 = arith.constant 25 : i32
    %76 = arith.addi %0, %c25_i32 : i32
    %77 = arith.index_cast %76 : i32 to index
    %78 = memref.load %arg1[%77] : memref<32xi32, #tpu.memory_space<smem>>
    %c26_i32 = arith.constant 26 : i32
    %79 = arith.addi %0, %c26_i32 : i32
    %80 = arith.index_cast %79 : i32 to index
    %81 = memref.load %arg1[%80] : memref<32xi32, #tpu.memory_space<smem>>
    %c27_i32 = arith.constant 27 : i32
    %82 = arith.addi %0, %c27_i32 : i32
    %83 = arith.index_cast %82 : i32 to index
    %84 = memref.load %arg1[%83] : memref<32xi32, #tpu.memory_space<smem>>
    %c28_i32 = arith.constant 28 : i32
    %85 = arith.addi %0, %c28_i32 : i32
    %86 = arith.index_cast %85 : i32 to index
    %87 = memref.load %arg1[%86] : memref<32xi32, #tpu.memory_space<smem>>
    %c29_i32 = arith.constant 29 : i32
    %88 = arith.addi %0, %c29_i32 : i32
    %89 = arith.index_cast %88 : i32 to index
    %90 = memref.load %arg1[%89] : memref<32xi32, #tpu.memory_space<smem>>
    %c30_i32 = arith.constant 30 : i32
    %91 = arith.addi %0, %c30_i32 : i32
    %92 = arith.index_cast %91 : i32 to index
    %93 = memref.load %arg1[%92] : memref<32xi32, #tpu.memory_space<smem>>
    %c31_i32 = arith.constant 31 : i32
    %94 = arith.addi %0, %c31_i32 : i32
    %95 = arith.index_cast %94 : i32 to index
    %96 = memref.load %arg1[%95] : memref<32xi32, #tpu.memory_space<smem>>
    %c0_i32_0 = arith.constant 0 : i32
    %c0_i32_1 = arith.constant 0 : i32
    %97 = tpu.memref_slice %arg2[%3, %c0_i32_1] : memref<64x128xf32, #tpu.memory_space<any>> -> memref<1x128xf32, #tpu.memory_space<any>>
    %c0_i32_2 = arith.constant 0 : i32
    %c0_i32_3 = arith.constant 0 : i32
    %98 = tpu.memref_slice %arg3[%c0_i32_2, %c0_i32_3] : memref<32x128xf32, #tpu.memory_space<vmem>> -> memref<1x128xf32, #tpu.memory_space<vmem>>
    %99 = tpu.memref_slice %arg4[%c0_i32_0] : memref<32x!tpu.dma_semaphore, #tpu.memory_space<semaphore_mem>> -> memref<1x!tpu.dma_semaphore, #tpu.memory_space<semaphore_mem>>
    %100 = tpu.memref_squeeze %99 : memref<1x!tpu.dma_semaphore, #tpu.memory_space<semaphore_mem>> -> memref<!tpu.dma_semaphore, #tpu.memory_space<semaphore_mem>>
    tpu.enqueue_dma source(%97 : memref<1x128xf32, #tpu.memory_space<any>>) target(%98 : memref<1x128xf32, #tpu.memory_space<vmem>>) target_semaphore(%100 : memref<!tpu.dma_semaphore, #tpu.memory_space<semaphore_mem>>)
    %c1_i32_4 = arith.constant 1 : i32
    %c0_i32_5 = arith.constant 0 : i32
    %101 = tpu.memref_slice %arg2[%6, %c0_i32_5] : memref<64x128xf32, #tpu.memory_space<any>> -> memref<1x128xf32, #tpu.memory_space<any>>
    %c1_i32_6 = arith.constant 1 : i32
    %c0_i32_7 = arith.constant 0 : i32
    %102 = tpu.memref_slice %arg3[%c1_i32_6, %c0_i32_7] : memref<32x128xf32, #tpu.memory_space<vmem>> -> memref<1x128xf32, #tpu.memory_space<vmem>>
    %103 = tpu.memref_slice %arg4[%c1_i32_4] : memref<32x!tpu.dma_semaphore, #tpu.memory_space<semaphore_mem>> -> memref<1x!tpu.dma_semaphore, #tpu.memory_space<semaphore_mem>>
    %104 = tpu.memref_squeeze %103 : memref<1x!tpu.dma_semaphore, #tpu.memory_space<semaphore_mem>> -> memref<!tpu.dma_semaphore, #tpu.memory_space<semaphore_mem>>
    tpu.enqueue_dma source(%101 : memref<1x128xf32, #tpu.memory_space<any>>) target(%102 : memref<1x128xf32, #tpu.memory_space<vmem>>) target_semaphore(%104 : memref<!tpu.dma_semaphore, #tpu.memory_space<semaphore_mem>>)
    %c2_i32_8 = arith.constant 2 : i32
    %c0_i32_9 = arith.constant 0 : i32
    %105 = tpu.memref_slice %arg2[%9, %c0_i32_9] : memref<64x128xf32, #tpu.memory_space<any>> -> memref<1x128xf32, #tpu.memory_space<any>>
    %c2_i32_10 = arith.constant 2 : i32
    %c0_i32_11 = arith.constant 0 : i32
    %106 = tpu.memref_slice %arg3[%c2_i32_10, %c0_i32_11] : memref<32x128xf32, #tpu.memory_space<vmem>> -> memref<1x128xf32, #tpu.memory_space<vmem>>
    %107 = tpu.memref_slice %arg4[%c2_i32_8] : memref<32x!tpu.dma_semaphore, #tpu.memory_space<semaphore_mem>> -> memref<1x!tpu.dma_semaphore, #tpu.memory_space<semaphore_mem>>
    %108 = tpu.memref_squeeze %107 : memref<1x!tpu.dma_semaphore, #tpu.memory_space<semaphore_mem>> -> memref<!tpu.dma_semaphore, #tpu.memory_space<semaphore_mem>>
    tpu.enqueue_dma source(%105 : memref<1x128xf32, #tpu.memory_space<any>>) target(%106 : memref<1x128xf32, #tpu.memory_space<vmem>>) target_semaphore(%108 : memref<!tpu.dma_semaphore, #tpu.memory_space<semaphore_mem>>)
    %c3_i32_12 = arith.constant 3 : i32
    %c0_i32_13 = arith.constant 0 : i32
    %109 = tpu.memref_slice %arg2[%12, %c0_i32_13] : memref<64x128xf32, #tpu.memory_space<any>> -> memref<1x128xf32, #tpu.memory_space<any>>
    %c3_i32_14 = arith.constant 3 : i32
    %c0_i32_15 = arith.constant 0 : i32
    %110 = tpu.memref_slice %arg3[%c3_i32_14, %c0_i32_15] : memref<32x128xf32, #tpu.memory_space<vmem>> -> memref<1x128xf32, #tpu.memory_space<vmem>>
    %111 = tpu.memref_slice %arg4[%c3_i32_12] : memref<32x!tpu.dma_semaphore, #tpu.memory_space<semaphore_mem>> -> memref<1x!tpu.dma_semaphore, #tpu.memory_space<semaphore_mem>>
    %112 = tpu.memref_squeeze %111 : memref<1x!tpu.dma_semaphore, #tpu.memory_space<semaphore_mem>> -> memref<!tpu.dma_semaphore, #tpu.memory_space<semaphore_mem>>
    tpu.enqueue_dma source(%109 : memref<1x128xf32, #tpu.memory_space<any>>) target(%110 : memref<1x128xf32, #tpu.memory_space<vmem>>) target_semaphore(%112 : memref<!tpu.dma_semaphore, #tpu.memory_space<semaphore_mem>>)
    %c4_i32_16 = arith.constant 4 : i32
    %c0_i32_17 = arith.constant 0 : i32
    %113 = tpu.memref_slice %arg2[%15, %c0_i32_17] : memref<64x128xf32, #tpu.memory_space<any>> -> memref<1x128xf32, #tpu.memory_space<any>>
    %c4_i32_18 = arith.constant 4 : i32
    %c0_i32_19 = arith.constant 0 : i32
    %114 = tpu.memref_slice %arg3[%c4_i32_18, %c0_i32_19] : memref<32x128xf32, #tpu.memory_space<vmem>> -> memref<1x128xf32, #tpu.memory_space<vmem>>
    %115 = tpu.memref_slice %arg4[%c4_i32_16] : memref<32x!tpu.dma_semaphore, #tpu.memory_space<semaphore_mem>> -> memref<1x!tpu.dma_semaphore, #tpu.memory_space<semaphore_mem>>
    %116 = tpu.memref_squeeze %115 : memref<1x!tpu.dma_semaphore, #tpu.memory_space<semaphore_mem>> -> memref<!tpu.dma_semaphore, #tpu.memory_space<semaphore_mem>>
    tpu.enqueue_dma source(%113 : memref<1x128xf32, #tpu.memory_space<any>>) target(%114 : memref<1x128xf32, #tpu.memory_space<vmem>>) target_semaphore(%116 : memref<!tpu.dma_semaphore, #tpu.memory_space<semaphore_mem>>)
    %c5_i32_20 = arith.constant 5 : i32
    %c0_i32_21 = arith.constant 0 : i32
    %117 = tpu.memref_slice %arg2[%18, %c0_i32_21] : memref<64x128xf32, #tpu.memory_space<any>> -> memref<1x128xf32, #tpu.memory_space<any>>
    %c5_i32_22 = arith.constant 5 : i32
    %c0_i32_23 = arith.constant 0 : i32
    %118 = tpu.memref_slice %arg3[%c5_i32_22, %c0_i32_23] : memref<32x128xf32, #tpu.memory_space<vmem>> -> memref<1x128xf32, #tpu.memory_space<vmem>>
    %119 = tpu.memref_slice %arg4[%c5_i32_20] : memref<32x!tpu.dma_semaphore, #tpu.memory_space<semaphore_mem>> -> memref<1x!tpu.dma_semaphore, #tpu.memory_space<semaphore_mem>>
    %120 = tpu.memref_squeeze %119 : memref<1x!tpu.dma_semaphore, #tpu.memory_space<semaphore_mem>> -> memref<!tpu.dma_semaphore, #tpu.memory_space<semaphore_mem>>
    tpu.enqueue_dma source(%117 : memref<1x128xf32, #tpu.memory_space<any>>) target(%118 : memref<1x128xf32, #tpu.memory_space<vmem>>) target_semaphore(%120 : memref<!tpu.dma_semaphore, #tpu.memory_space<semaphore_mem>>)
    %c6_i32_24 = arith.constant 6 : i32
    %c0_i32_25 = arith.constant 0 : i32
    %121 = tpu.memref_slice %arg2[%21, %c0_i32_25] : memref<64x128xf32, #tpu.memory_space<any>> -> memref<1x128xf32, #tpu.memory_space<any>>
    %c6_i32_26 = arith.constant 6 : i32
    %c0_i32_27 = arith.constant 0 : i32
    %122 = tpu.memref_slice %arg3[%c6_i32_26, %c0_i32_27] : memref<32x128xf32, #tpu.memory_space<vmem>> -> memref<1x128xf32, #tpu.memory_space<vmem>>
    %123 = tpu.memref_slice %arg4[%c6_i32_24] : memref<32x!tpu.dma_semaphore, #tpu.memory_space<semaphore_mem>> -> memref<1x!tpu.dma_semaphore, #tpu.memory_space<semaphore_mem>>
    %124 = tpu.memref_squeeze %123 : memref<1x!tpu.dma_semaphore, #tpu.memory_space<semaphore_mem>> -> memref<!tpu.dma_semaphore, #tpu.memory_space<semaphore_mem>>
    tpu.enqueue_dma source(%121 : memref<1x128xf32, #tpu.memory_space<any>>) target(%122 : memref<1x128xf32, #tpu.memory_space<vmem>>) target_semaphore(%124 : memref<!tpu.dma_semaphore, #tpu.memory_space<semaphore_mem>>)
    %c7_i32_28 = arith.constant 7 : i32
    %c0_i32_29 = arith.constant 0 : i32
    %125 = tpu.memref_slice %arg2[%24, %c0_i32_29] : memref<64x128xf32, #tpu.memory_space<any>> -> memref<1x128xf32, #tpu.memory_space<any>>
    %c7_i32_30 = arith.constant 7 : i32
    %c0_i32_31 = arith.constant 0 : i32
    %126 = tpu.memref_slice %arg3[%c7_i32_30, %c0_i32_31] : memref<32x128xf32, #tpu.memory_space<vmem>> -> memref<1x128xf32, #tpu.memory_space<vmem>>
    %127 = tpu.memref_slice %arg4[%c7_i32_28] : memref<32x!tpu.dma_semaphore, #tpu.memory_space<semaphore_mem>> -> memref<1x!tpu.dma_semaphore, #tpu.memory_space<semaphore_mem>>
    %128 = tpu.memref_squeeze %127 : memref<1x!tpu.dma_semaphore, #tpu.memory_space<semaphore_mem>> -> memref<!tpu.dma_semaphore, #tpu.memory_space<semaphore_mem>>
    tpu.enqueue_dma source(%125 : memref<1x128xf32, #tpu.memory_space<any>>) target(%126 : memref<1x128xf32, #tpu.memory_space<vmem>>) target_semaphore(%128 : memref<!tpu.dma_semaphore, #tpu.memory_space<semaphore_mem>>)
    %c8_i32_32 = arith.constant 8 : i32
    %c0_i32_33 = arith.constant 0 : i32
    %129 = tpu.memref_slice %arg2[%27, %c0_i32_33] : memref<64x128xf32, #tpu.memory_space<any>> -> memref<1x128xf32, #tpu.memory_space<any>>
    %c8_i32_34 = arith.constant 8 : i32
    %c0_i32_35 = arith.constant 0 : i32
    %130 = tpu.memref_slice %arg3[%c8_i32_34, %c0_i32_35] : memref<32x128xf32, #tpu.memory_space<vmem>> -> memref<1x128xf32, #tpu.memory_space<vmem>>
    %131 = tpu.memref_slice %arg4[%c8_i32_32] : memref<32x!tpu.dma_semaphore, #tpu.memory_space<semaphore_mem>> -> memref<1x!tpu.dma_semaphore, #tpu.memory_space<semaphore_mem>>
    %132 = tpu.memref_squeeze %131 : memref<1x!tpu.dma_semaphore, #tpu.memory_space<semaphore_mem>> -> memref<!tpu.dma_semaphore, #tpu.memory_space<semaphore_mem>>
    tpu.enqueue_dma source(%129 : memref<1x128xf32, #tpu.memory_space<any>>) target(%130 : memref<1x128xf32, #tpu.memory_space<vmem>>) target_semaphore(%132 : memref<!tpu.dma_semaphore, #tpu.memory_space<semaphore_mem>>)
    %c9_i32_36 = arith.constant 9 : i32
    %c0_i32_37 = arith.constant 0 : i32
    %133 = tpu.memref_slice %arg2[%30, %c0_i32_37] : memref<64x128xf32, #tpu.memory_space<any>> -> memref<1x128xf32, #tpu.memory_space<any>>
    %c9_i32_38 = arith.constant 9 : i32
    %c0_i32_39 = arith.constant 0 : i32
    %134 = tpu.memref_slice %arg3[%c9_i32_38, %c0_i32_39] : memref<32x128xf32, #tpu.memory_space<vmem>> -> memref<1x128xf32, #tpu.memory_space<vmem>>
    %135 = tpu.memref_slice %arg4[%c9_i32_36] : memref<32x!tpu.dma_semaphore, #tpu.memory_space<semaphore_mem>> -> memref<1x!tpu.dma_semaphore, #tpu.memory_space<semaphore_mem>>
    %136 = tpu.memref_squeeze %135 : memref<1x!tpu.dma_semaphore, #tpu.memory_space<semaphore_mem>> -> memref<!tpu.dma_semaphore, #tpu.memory_space<semaphore_mem>>
    tpu.enqueue_dma source(%133 : memref<1x128xf32, #tpu.memory_space<any>>) target(%134 : memref<1x128xf32, #tpu.memory_space<vmem>>) target_semaphore(%136 : memref<!tpu.dma_semaphore, #tpu.memory_space<semaphore_mem>>)
    %c10_i32_40 = arith.constant 10 : i32
    %c0_i32_41 = arith.constant 0 : i32
    %137 = tpu.memref_slice %arg2[%33, %c0_i32_41] : memref<64x128xf32, #tpu.memory_space<any>> -> memref<1x128xf32, #tpu.memory_space<any>>
    %c10_i32_42 = arith.constant 10 : i32
    %c0_i32_43 = arith.constant 0 : i32
    %138 = tpu.memref_slice %arg3[%c10_i32_42, %c0_i32_43] : memref<32x128xf32, #tpu.memory_space<vmem>> -> memref<1x128xf32, #tpu.memory_space<vmem>>
    %139 = tpu.memref_slice %arg4[%c10_i32_40] : memref<32x!tpu.dma_semaphore, #tpu.memory_space<semaphore_mem>> -> memref<1x!tpu.dma_semaphore, #tpu.memory_space<semaphore_mem>>
    %140 = tpu.memref_squeeze %139 : memref<1x!tpu.dma_semaphore, #tpu.memory_space<semaphore_mem>> -> memref<!tpu.dma_semaphore, #tpu.memory_space<semaphore_mem>>
    tpu.enqueue_dma source(%137 : memref<1x128xf32, #tpu.memory_space<any>>) target(%138 : memref<1x128xf32, #tpu.memory_space<vmem>>) target_semaphore(%140 : memref<!tpu.dma_semaphore, #tpu.memory_space<semaphore_mem>>)
    %c11_i32_44 = arith.constant 11 : i32
    %c0_i32_45 = arith.constant 0 : i32
    %141 = tpu.memref_slice %arg2[%36, %c0_i32_45] : memref<64x128xf32, #tpu.memory_space<any>> -> memref<1x128xf32, #tpu.memory_space<any>>
    %c11_i32_46 = arith.constant 11 : i32
    %c0_i32_47 = arith.constant 0 : i32
    %142 = tpu.memref_slice %arg3[%c11_i32_46, %c0_i32_47] : memref<32x128xf32, #tpu.memory_space<vmem>> -> memref<1x128xf32, #tpu.memory_space<vmem>>
    %143 = tpu.memref_slice %arg4[%c11_i32_44] : memref<32x!tpu.dma_semaphore, #tpu.memory_space<semaphore_mem>> -> memref<1x!tpu.dma_semaphore, #tpu.memory_space<semaphore_mem>>
    %144 = tpu.memref_squeeze %143 : memref<1x!tpu.dma_semaphore, #tpu.memory_space<semaphore_mem>> -> memref<!tpu.dma_semaphore, #tpu.memory_space<semaphore_mem>>
    tpu.enqueue_dma source(%141 : memref<1x128xf32, #tpu.memory_space<any>>) target(%142 : memref<1x128xf32, #tpu.memory_space<vmem>>) target_semaphore(%144 : memref<!tpu.dma_semaphore, #tpu.memory_space<semaphore_mem>>)
    %c12_i32_48 = arith.constant 12 : i32
    %c0_i32_49 = arith.constant 0 : i32
    %145 = tpu.memref_slice %arg2[%39, %c0_i32_49] : memref<64x128xf32, #tpu.memory_space<any>> -> memref<1x128xf32, #tpu.memory_space<any>>
    %c12_i32_50 = arith.constant 12 : i32
    %c0_i32_51 = arith.constant 0 : i32
    %146 = tpu.memref_slice %arg3[%c12_i32_50, %c0_i32_51] : memref<32x128xf32, #tpu.memory_space<vmem>> -> memref<1x128xf32, #tpu.memory_space<vmem>>
    %147 = tpu.memref_slice %arg4[%c12_i32_48] : memref<32x!tpu.dma_semaphore, #tpu.memory_space<semaphore_mem>> -> memref<1x!tpu.dma_semaphore, #tpu.memory_space<semaphore_mem>>
    %148 = tpu.memref_squeeze %147 : memref<1x!tpu.dma_semaphore, #tpu.memory_space<semaphore_mem>> -> memref<!tpu.dma_semaphore, #tpu.memory_space<semaphore_mem>>
    tpu.enqueue_dma source(%145 : memref<1x128xf32, #tpu.memory_space<any>>) target(%146 : memref<1x128xf32, #tpu.memory_space<vmem>>) target_semaphore(%148 : memref<!tpu.dma_semaphore, #tpu.memory_space<semaphore_mem>>)
    %c13_i32_52 = arith.constant 13 : i32
    %c0_i32_53 = arith.constant 0 : i32
    %149 = tpu.memref_slice %arg2[%42, %c0_i32_53] : memref<64x128xf32, #tpu.memory_space<any>> -> memref<1x128xf32, #tpu.memory_space<any>>
    %c13_i32_54 = arith.constant 13 : i32
    %c0_i32_55 = arith.constant 0 : i32
    %150 = tpu.memref_slice %arg3[%c13_i32_54, %c0_i32_55] : memref<32x128xf32, #tpu.memory_space<vmem>> -> memref<1x128xf32, #tpu.memory_space<vmem>>
    %151 = tpu.memref_slice %arg4[%c13_i32_52] : memref<32x!tpu.dma_semaphore, #tpu.memory_space<semaphore_mem>> -> memref<1x!tpu.dma_semaphore, #tpu.memory_space<semaphore_mem>>
    %152 = tpu.memref_squeeze %151 : memref<1x!tpu.dma_semaphore, #tpu.memory_space<semaphore_mem>> -> memref<!tpu.dma_semaphore, #tpu.memory_space<semaphore_mem>>
    tpu.enqueue_dma source(%149 : memref<1x128xf32, #tpu.memory_space<any>>) target(%150 : memref<1x128xf32, #tpu.memory_space<vmem>>) target_semaphore(%152 : memref<!tpu.dma_semaphore, #tpu.memory_space<semaphore_mem>>)
    %c14_i32_56 = arith.constant 14 : i32
    %c0_i32_57 = arith.constant 0 : i32
    %153 = tpu.memref_slice %arg2[%45, %c0_i32_57] : memref<64x128xf32, #tpu.memory_space<any>> -> memref<1x128xf32, #tpu.memory_space<any>>
    %c14_i32_58 = arith.constant 14 : i32
    %c0_i32_59 = arith.constant 0 : i32
    %154 = tpu.memref_slice %arg3[%c14_i32_58, %c0_i32_59] : memref<32x128xf32, #tpu.memory_space<vmem>> -> memref<1x128xf32, #tpu.memory_space<vmem>>
    %155 = tpu.memref_slice %arg4[%c14_i32_56] : memref<32x!tpu.dma_semaphore, #tpu.memory_space<semaphore_mem>> -> memref<1x!tpu.dma_semaphore, #tpu.memory_space<semaphore_mem>>
    %156 = tpu.memref_squeeze %155 : memref<1x!tpu.dma_semaphore, #tpu.memory_space<semaphore_mem>> -> memref<!tpu.dma_semaphore, #tpu.memory_space<semaphore_mem>>
    tpu.enqueue_dma source(%153 : memref<1x128xf32, #tpu.memory_space<any>>) target(%154 : memref<1x128xf32, #tpu.memory_space<vmem>>) target_semaphore(%156 : memref<!tpu.dma_semaphore, #tpu.memory_space<semaphore_mem>>)
    %c15_i32_60 = arith.constant 15 : i32
    %c0_i32_61 = arith.constant 0 : i32
    %157 = tpu.memref_slice %arg2[%48, %c0_i32_61] : memref<64x128xf32, #tpu.memory_space<any>> -> memref<1x128xf32, #tpu.memory_space<any>>
    %c15_i32_62 = arith.constant 15 : i32
    %c0_i32_63 = arith.constant 0 : i32
    %158 = tpu.memref_slice %arg3[%c15_i32_62, %c0_i32_63] : memref<32x128xf32, #tpu.memory_space<vmem>> -> memref<1x128xf32, #tpu.memory_space<vmem>>
    %159 = tpu.memref_slice %arg4[%c15_i32_60] : memref<32x!tpu.dma_semaphore, #tpu.memory_space<semaphore_mem>> -> memref<1x!tpu.dma_semaphore, #tpu.memory_space<semaphore_mem>>
    %160 = tpu.memref_squeeze %159 : memref<1x!tpu.dma_semaphore, #tpu.memory_space<semaphore_mem>> -> memref<!tpu.dma_semaphore, #tpu.memory_space<semaphore_mem>>
    tpu.enqueue_dma source(%157 : memref<1x128xf32, #tpu.memory_space<any>>) target(%158 : memref<1x128xf32, #tpu.memory_space<vmem>>) target_semaphore(%160 : memref<!tpu.dma_semaphore, #tpu.memory_space<semaphore_mem>>)
    %c16_i32_64 = arith.constant 16 : i32
    %c0_i32_65 = arith.constant 0 : i32
    %161 = tpu.memref_slice %arg2[%51, %c0_i32_65] : memref<64x128xf32, #tpu.memory_space<any>> -> memref<1x128xf32, #tpu.memory_space<any>>
    %c16_i32_66 = arith.constant 16 : i32
    %c0_i32_67 = arith.constant 0 : i32
    %162 = tpu.memref_slice %arg3[%c16_i32_66, %c0_i32_67] : memref<32x128xf32, #tpu.memory_space<vmem>> -> memref<1x128xf32, #tpu.memory_space<vmem>>
    %163 = tpu.memref_slice %arg4[%c16_i32_64] : memref<32x!tpu.dma_semaphore, #tpu.memory_space<semaphore_mem>> -> memref<1x!tpu.dma_semaphore, #tpu.memory_space<semaphore_mem>>
    %164 = tpu.memref_squeeze %163 : memref<1x!tpu.dma_semaphore, #tpu.memory_space<semaphore_mem>> -> memref<!tpu.dma_semaphore, #tpu.memory_space<semaphore_mem>>
    tpu.enqueue_dma source(%161 : memref<1x128xf32, #tpu.memory_space<any>>) target(%162 : memref<1x128xf32, #tpu.memory_space<vmem>>) target_semaphore(%164 : memref<!tpu.dma_semaphore, #tpu.memory_space<semaphore_mem>>)
    %c17_i32_68 = arith.constant 17 : i32
    %c0_i32_69 = arith.constant 0 : i32
    %165 = tpu.memref_slice %arg2[%54, %c0_i32_69] : memref<64x128xf32, #tpu.memory_space<any>> -> memref<1x128xf32, #tpu.memory_space<any>>
    %c17_i32_70 = arith.constant 17 : i32
    %c0_i32_71 = arith.constant 0 : i32
    %166 = tpu.memref_slice %arg3[%c17_i32_70, %c0_i32_71] : memref<32x128xf32, #tpu.memory_space<vmem>> -> memref<1x128xf32, #tpu.memory_space<vmem>>
    %167 = tpu.memref_slice %arg4[%c17_i32_68] : memref<32x!tpu.dma_semaphore, #tpu.memory_space<semaphore_mem>> -> memref<1x!tpu.dma_semaphore, #tpu.memory_space<semaphore_mem>>
    %168 = tpu.memref_squeeze %167 : memref<1x!tpu.dma_semaphore, #tpu.memory_space<semaphore_mem>> -> memref<!tpu.dma_semaphore, #tpu.memory_space<semaphore_mem>>
    tpu.enqueue_dma source(%165 : memref<1x128xf32, #tpu.memory_space<any>>) target(%166 : memref<1x128xf32, #tpu.memory_space<vmem>>) target_semaphore(%168 : memref<!tpu.dma_semaphore, #tpu.memory_space<semaphore_mem>>)
    %c18_i32_72 = arith.constant 18 : i32
    %c0_i32_73 = arith.constant 0 : i32
    %169 = tpu.memref_slice %arg2[%57, %c0_i32_73] : memref<64x128xf32, #tpu.memory_space<any>> -> memref<1x128xf32, #tpu.memory_space<any>>
    %c18_i32_74 = arith.constant 18 : i32
    %c0_i32_75 = arith.constant 0 : i32
    %170 = tpu.memref_slice %arg3[%c18_i32_74, %c0_i32_75] : memref<32x128xf32, #tpu.memory_space<vmem>> -> memref<1x128xf32, #tpu.memory_space<vmem>>
    %171 = tpu.memref_slice %arg4[%c18_i32_72] : memref<32x!tpu.dma_semaphore, #tpu.memory_space<semaphore_mem>> -> memref<1x!tpu.dma_semaphore, #tpu.memory_space<semaphore_mem>>
    %172 = tpu.memref_squeeze %171 : memref<1x!tpu.dma_semaphore, #tpu.memory_space<semaphore_mem>> -> memref<!tpu.dma_semaphore, #tpu.memory_space<semaphore_mem>>
    tpu.enqueue_dma source(%169 : memref<1x128xf32, #tpu.memory_space<any>>) target(%170 : memref<1x128xf32, #tpu.memory_space<vmem>>) target_semaphore(%172 : memref<!tpu.dma_semaphore, #tpu.memory_space<semaphore_mem>>)
    %c19_i32_76 = arith.constant 19 : i32
    %c0_i32_77 = arith.constant 0 : i32
    %173 = tpu.memref_slice %arg2[%60, %c0_i32_77] : memref<64x128xf32, #tpu.memory_space<any>> -> memref<1x128xf32, #tpu.memory_space<any>>
    %c19_i32_78 = arith.constant 19 : i32
    %c0_i32_79 = arith.constant 0 : i32
    %174 = tpu.memref_slice %arg3[%c19_i32_78, %c0_i32_79] : memref<32x128xf32, #tpu.memory_space<vmem>> -> memref<1x128xf32, #tpu.memory_space<vmem>>
    %175 = tpu.memref_slice %arg4[%c19_i32_76] : memref<32x!tpu.dma_semaphore, #tpu.memory_space<semaphore_mem>> -> memref<1x!tpu.dma_semaphore, #tpu.memory_space<semaphore_mem>>
    %176 = tpu.memref_squeeze %175 : memref<1x!tpu.dma_semaphore, #tpu.memory_space<semaphore_mem>> -> memref<!tpu.dma_semaphore, #tpu.memory_space<semaphore_mem>>
    tpu.enqueue_dma source(%173 : memref<1x128xf32, #tpu.memory_space<any>>) target(%174 : memref<1x128xf32, #tpu.memory_space<vmem>>) target_semaphore(%176 : memref<!tpu.dma_semaphore, #tpu.memory_space<semaphore_mem>>)
    %c20_i32_80 = arith.constant 20 : i32
    %c0_i32_81 = arith.constant 0 : i32
    %177 = tpu.memref_slice %arg2[%63, %c0_i32_81] : memref<64x128xf32, #tpu.memory_space<any>> -> memref<1x128xf32, #tpu.memory_space<any>>
    %c20_i32_82 = arith.constant 20 : i32
    %c0_i32_83 = arith.constant 0 : i32
    %178 = tpu.memref_slice %arg3[%c20_i32_82, %c0_i32_83] : memref<32x128xf32, #tpu.memory_space<vmem>> -> memref<1x128xf32, #tpu.memory_space<vmem>>
    %179 = tpu.memref_slice %arg4[%c20_i32_80] : memref<32x!tpu.dma_semaphore, #tpu.memory_space<semaphore_mem>> -> memref<1x!tpu.dma_semaphore, #tpu.memory_space<semaphore_mem>>
    %180 = tpu.memref_squeeze %179 : memref<1x!tpu.dma_semaphore, #tpu.memory_space<semaphore_mem>> -> memref<!tpu.dma_semaphore, #tpu.memory_space<semaphore_mem>>
    tpu.enqueue_dma source(%177 : memref<1x128xf32, #tpu.memory_space<any>>) target(%178 : memref<1x128xf32, #tpu.memory_space<vmem>>) target_semaphore(%180 : memref<!tpu.dma_semaphore, #tpu.memory_space<semaphore_mem>>)
    %c21_i32_84 = arith.constant 21 : i32
    %c0_i32_85 = arith.constant 0 : i32
    %181 = tpu.memref_slice %arg2[%66, %c0_i32_85] : memref<64x128xf32, #tpu.memory_space<any>> -> memref<1x128xf32, #tpu.memory_space<any>>
    %c21_i32_86 = arith.constant 21 : i32
    %c0_i32_87 = arith.constant 0 : i32
    %182 = tpu.memref_slice %arg3[%c21_i32_86, %c0_i32_87] : memref<32x128xf32, #tpu.memory_space<vmem>> -> memref<1x128xf32, #tpu.memory_space<vmem>>
    %183 = tpu.memref_slice %arg4[%c21_i32_84] : memref<32x!tpu.dma_semaphore, #tpu.memory_space<semaphore_mem>> -> memref<1x!tpu.dma_semaphore, #tpu.memory_space<semaphore_mem>>
    %184 = tpu.memref_squeeze %183 : memref<1x!tpu.dma_semaphore, #tpu.memory_space<semaphore_mem>> -> memref<!tpu.dma_semaphore, #tpu.memory_space<semaphore_mem>>
    tpu.enqueue_dma source(%181 : memref<1x128xf32, #tpu.memory_space<any>>) target(%182 : memref<1x128xf32, #tpu.memory_space<vmem>>) target_semaphore(%184 : memref<!tpu.dma_semaphore, #tpu.memory_space<semaphore_mem>>)
    %c22_i32_88 = arith.constant 22 : i32
    %c0_i32_89 = arith.constant 0 : i32
    %185 = tpu.memref_slice %arg2[%69, %c0_i32_89] : memref<64x128xf32, #tpu.memory_space<any>> -> memref<1x128xf32, #tpu.memory_space<any>>
    %c22_i32_90 = arith.constant 22 : i32
    %c0_i32_91 = arith.constant 0 : i32
    %186 = tpu.memref_slice %arg3[%c22_i32_90, %c0_i32_91] : memref<32x128xf32, #tpu.memory_space<vmem>> -> memref<1x128xf32, #tpu.memory_space<vmem>>
    %187 = tpu.memref_slice %arg4[%c22_i32_88] : memref<32x!tpu.dma_semaphore, #tpu.memory_space<semaphore_mem>> -> memref<1x!tpu.dma_semaphore, #tpu.memory_space<semaphore_mem>>
    %188 = tpu.memref_squeeze %187 : memref<1x!tpu.dma_semaphore, #tpu.memory_space<semaphore_mem>> -> memref<!tpu.dma_semaphore, #tpu.memory_space<semaphore_mem>>
    tpu.enqueue_dma source(%185 : memref<1x128xf32, #tpu.memory_space<any>>) target(%186 : memref<1x128xf32, #tpu.memory_space<vmem>>) target_semaphore(%188 : memref<!tpu.dma_semaphore, #tpu.memory_space<semaphore_mem>>)
    %c23_i32_92 = arith.constant 23 : i32
    %c0_i32_93 = arith.constant 0 : i32
    %189 = tpu.memref_slice %arg2[%72, %c0_i32_93] : memref<64x128xf32, #tpu.memory_space<any>> -> memref<1x128xf32, #tpu.memory_space<any>>
    %c23_i32_94 = arith.constant 23 : i32
    %c0_i32_95 = arith.constant 0 : i32
    %190 = tpu.memref_slice %arg3[%c23_i32_94, %c0_i32_95] : memref<32x128xf32, #tpu.memory_space<vmem>> -> memref<1x128xf32, #tpu.memory_space<vmem>>
    %191 = tpu.memref_slice %arg4[%c23_i32_92] : memref<32x!tpu.dma_semaphore, #tpu.memory_space<semaphore_mem>> -> memref<1x!tpu.dma_semaphore, #tpu.memory_space<semaphore_mem>>
    %192 = tpu.memref_squeeze %191 : memref<1x!tpu.dma_semaphore, #tpu.memory_space<semaphore_mem>> -> memref<!tpu.dma_semaphore, #tpu.memory_space<semaphore_mem>>
    tpu.enqueue_dma source(%189 : memref<1x128xf32, #tpu.memory_space<any>>) target(%190 : memref<1x128xf32, #tpu.memory_space<vmem>>) target_semaphore(%192 : memref<!tpu.dma_semaphore, #tpu.memory_space<semaphore_mem>>)
    %c24_i32_96 = arith.constant 24 : i32
    %c0_i32_97 = arith.constant 0 : i32
    %193 = tpu.memref_slice %arg2[%75, %c0_i32_97] : memref<64x128xf32, #tpu.memory_space<any>> -> memref<1x128xf32, #tpu.memory_space<any>>
    %c24_i32_98 = arith.constant 24 : i32
    %c0_i32_99 = arith.constant 0 : i32
    %194 = tpu.memref_slice %arg3[%c24_i32_98, %c0_i32_99] : memref<32x128xf32, #tpu.memory_space<vmem>> -> memref<1x128xf32, #tpu.memory_space<vmem>>
    %195 = tpu.memref_slice %arg4[%c24_i32_96] : memref<32x!tpu.dma_semaphore, #tpu.memory_space<semaphore_mem>> -> memref<1x!tpu.dma_semaphore, #tpu.memory_space<semaphore_mem>>
    %196 = tpu.memref_squeeze %195 : memref<1x!tpu.dma_semaphore, #tpu.memory_space<semaphore_mem>> -> memref<!tpu.dma_semaphore, #tpu.memory_space<semaphore_mem>>
    tpu.enqueue_dma source(%193 : memref<1x128xf32, #tpu.memory_space<any>>) target(%194 : memref<1x128xf32, #tpu.memory_space<vmem>>) target_semaphore(%196 : memref<!tpu.dma_semaphore, #tpu.memory_space<semaphore_mem>>)
    %c25_i32_100 = arith.constant 25 : i32
    %c0_i32_101 = arith.constant 0 : i32
    %197 = tpu.memref_slice %arg2[%78, %c0_i32_101] : memref<64x128xf32, #tpu.memory_space<any>> -> memref<1x128xf32, #tpu.memory_space<any>>
    %c25_i32_102 = arith.constant 25 : i32
    %c0_i32_103 = arith.constant 0 : i32
    %198 = tpu.memref_slice %arg3[%c25_i32_102, %c0_i32_103] : memref<32x128xf32, #tpu.memory_space<vmem>> -> memref<1x128xf32, #tpu.memory_space<vmem>>
    %199 = tpu.memref_slice %arg4[%c25_i32_100] : memref<32x!tpu.dma_semaphore, #tpu.memory_space<semaphore_mem>> -> memref<1x!tpu.dma_semaphore, #tpu.memory_space<semaphore_mem>>
    %200 = tpu.memref_squeeze %199 : memref<1x!tpu.dma_semaphore, #tpu.memory_space<semaphore_mem>> -> memref<!tpu.dma_semaphore, #tpu.memory_space<semaphore_mem>>
    tpu.enqueue_dma source(%197 : memref<1x128xf32, #tpu.memory_space<any>>) target(%198 : memref<1x128xf32, #tpu.memory_space<vmem>>) target_semaphore(%200 : memref<!tpu.dma_semaphore, #tpu.memory_space<semaphore_mem>>)
    %c26_i32_104 = arith.constant 26 : i32
    %c0_i32_105 = arith.constant 0 : i32
    %201 = tpu.memref_slice %arg2[%81, %c0_i32_105] : memref<64x128xf32, #tpu.memory_space<any>> -> memref<1x128xf32, #tpu.memory_space<any>>
    %c26_i32_106 = arith.constant 26 : i32
    %c0_i32_107 = arith.constant 0 : i32
    %202 = tpu.memref_slice %arg3[%c26_i32_106, %c0_i32_107] : memref<32x128xf32, #tpu.memory_space<vmem>> -> memref<1x128xf32, #tpu.memory_space<vmem>>
    %203 = tpu.memref_slice %arg4[%c26_i32_104] : memref<32x!tpu.dma_semaphore, #tpu.memory_space<semaphore_mem>> -> memref<1x!tpu.dma_semaphore, #tpu.memory_space<semaphore_mem>>
    %204 = tpu.memref_squeeze %203 : memref<1x!tpu.dma_semaphore, #tpu.memory_space<semaphore_mem>> -> memref<!tpu.dma_semaphore, #tpu.memory_space<semaphore_mem>>
    tpu.enqueue_dma source(%201 : memref<1x128xf32, #tpu.memory_space<any>>) target(%202 : memref<1x128xf32, #tpu.memory_space<vmem>>) target_semaphore(%204 : memref<!tpu.dma_semaphore, #tpu.memory_space<semaphore_mem>>)
    %c27_i32_108 = arith.constant 27 : i32
    %c0_i32_109 = arith.constant 0 : i32
    %205 = tpu.memref_slice %arg2[%84, %c0_i32_109] : memref<64x128xf32, #tpu.memory_space<any>> -> memref<1x128xf32, #tpu.memory_space<any>>
    %c27_i32_110 = arith.constant 27 : i32
    %c0_i32_111 = arith.constant 0 : i32
    %206 = tpu.memref_slice %arg3[%c27_i32_110, %c0_i32_111] : memref<32x128xf32, #tpu.memory_space<vmem>> -> memref<1x128xf32, #tpu.memory_space<vmem>>
    %207 = tpu.memref_slice %arg4[%c27_i32_108] : memref<32x!tpu.dma_semaphore, #tpu.memory_space<semaphore_mem>> -> memref<1x!tpu.dma_semaphore, #tpu.memory_space<semaphore_mem>>
    %208 = tpu.memref_squeeze %207 : memref<1x!tpu.dma_semaphore, #tpu.memory_space<semaphore_mem>> -> memref<!tpu.dma_semaphore, #tpu.memory_space<semaphore_mem>>
    tpu.enqueue_dma source(%205 : memref<1x128xf32, #tpu.memory_space<any>>) target(%206 : memref<1x128xf32, #tpu.memory_space<vmem>>) target_semaphore(%208 : memref<!tpu.dma_semaphore, #tpu.memory_space<semaphore_mem>>)
    %c28_i32_112 = arith.constant 28 : i32
    %c0_i32_113 = arith.constant 0 : i32
    %209 = tpu.memref_slice %arg2[%87, %c0_i32_113] : memref<64x128xf32, #tpu.memory_space<any>> -> memref<1x128xf32, #tpu.memory_space<any>>
    %c28_i32_114 = arith.constant 28 : i32
    %c0_i32_115 = arith.constant 0 : i32
    %210 = tpu.memref_slice %arg3[%c28_i32_114, %c0_i32_115] : memref<32x128xf32, #tpu.memory_space<vmem>> -> memref<1x128xf32, #tpu.memory_space<vmem>>
    %211 = tpu.memref_slice %arg4[%c28_i32_112] : memref<32x!tpu.dma_semaphore, #tpu.memory_space<semaphore_mem>> -> memref<1x!tpu.dma_semaphore, #tpu.memory_space<semaphore_mem>>
    %212 = tpu.memref_squeeze %211 : memref<1x!tpu.dma_semaphore, #tpu.memory_space<semaphore_mem>> -> memref<!tpu.dma_semaphore, #tpu.memory_space<semaphore_mem>>
    tpu.enqueue_dma source(%209 : memref<1x128xf32, #tpu.memory_space<any>>) target(%210 : memref<1x128xf32, #tpu.memory_space<vmem>>) target_semaphore(%212 : memref<!tpu.dma_semaphore, #tpu.memory_space<semaphore_mem>>)
    %c29_i32_116 = arith.constant 29 : i32
    %c0_i32_117 = arith.constant 0 : i32
    %213 = tpu.memref_slice %arg2[%90, %c0_i32_117] : memref<64x128xf32, #tpu.memory_space<any>> -> memref<1x128xf32, #tpu.memory_space<any>>
    %c29_i32_118 = arith.constant 29 : i32
    %c0_i32_119 = arith.constant 0 : i32
    %214 = tpu.memref_slice %arg3[%c29_i32_118, %c0_i32_119] : memref<32x128xf32, #tpu.memory_space<vmem>> -> memref<1x128xf32, #tpu.memory_space<vmem>>
    %215 = tpu.memref_slice %arg4[%c29_i32_116] : memref<32x!tpu.dma_semaphore, #tpu.memory_space<semaphore_mem>> -> memref<1x!tpu.dma_semaphore, #tpu.memory_space<semaphore_mem>>
    %216 = tpu.memref_squeeze %215 : memref<1x!tpu.dma_semaphore, #tpu.memory_space<semaphore_mem>> -> memref<!tpu.dma_semaphore, #tpu.memory_space<semaphore_mem>>
    tpu.enqueue_dma source(%213 : memref<1x128xf32, #tpu.memory_space<any>>) target(%214 : memref<1x128xf32, #tpu.memory_space<vmem>>) target_semaphore(%216 : memref<!tpu.dma_semaphore, #tpu.memory_space<semaphore_mem>>)
    %c30_i32_120 = arith.constant 30 : i32
    %c0_i32_121 = arith.constant 0 : i32
    %217 = tpu.memref_slice %arg2[%93, %c0_i32_121] : memref<64x128xf32, #tpu.memory_space<any>> -> memref<1x128xf32, #tpu.memory_space<any>>
    %c30_i32_122 = arith.constant 30 : i32
    %c0_i32_123 = arith.constant 0 : i32
    %218 = tpu.memref_slice %arg3[%c30_i32_122, %c0_i32_123] : memref<32x128xf32, #tpu.memory_space<vmem>> -> memref<1x128xf32, #tpu.memory_space<vmem>>
    %219 = tpu.memref_slice %arg4[%c30_i32_120] : memref<32x!tpu.dma_semaphore, #tpu.memory_space<semaphore_mem>> -> memref<1x!tpu.dma_semaphore, #tpu.memory_space<semaphore_mem>>
    %220 = tpu.memref_squeeze %219 : memref<1x!tpu.dma_semaphore, #tpu.memory_space<semaphore_mem>> -> memref<!tpu.dma_semaphore, #tpu.memory_space<semaphore_mem>>
    tpu.enqueue_dma source(%217 : memref<1x128xf32, #tpu.memory_space<any>>) target(%218 : memref<1x128xf32, #tpu.memory_space<vmem>>) target_semaphore(%220 : memref<!tpu.dma_semaphore, #tpu.memory_space<semaphore_mem>>)
    %c31_i32_124 = arith.constant 31 : i32
    %c0_i32_125 = arith.constant 0 : i32
    %221 = tpu.memref_slice %arg2[%96, %c0_i32_125] : memref<64x128xf32, #tpu.memory_space<any>> -> memref<1x128xf32, #tpu.memory_space<any>>
    %c31_i32_126 = arith.constant 31 : i32
    %c0_i32_127 = arith.constant 0 : i32
    %222 = tpu.memref_slice %arg3[%c31_i32_126, %c0_i32_127] : memref<32x128xf32, #tpu.memory_space<vmem>> -> memref<1x128xf32, #tpu.memory_space<vmem>>
    %223 = tpu.memref_slice %arg4[%c31_i32_124] : memref<32x!tpu.dma_semaphore, #tpu.memory_space<semaphore_mem>> -> memref<1x!tpu.dma_semaphore, #tpu.memory_space<semaphore_mem>>
    %224 = tpu.memref_squeeze %223 : memref<1x!tpu.dma_semaphore, #tpu.memory_space<semaphore_mem>> -> memref<!tpu.dma_semaphore, #tpu.memory_space<semaphore_mem>>
    tpu.enqueue_dma source(%221 : memref<1x128xf32, #tpu.memory_space<any>>) target(%222 : memref<1x128xf32, #tpu.memory_space<vmem>>) target_semaphore(%224 : memref<!tpu.dma_semaphore, #tpu.memory_space<semaphore_mem>>)
    %c0_i32_128 = arith.constant 0 : i32
    %c0_i32_129 = arith.constant 0 : i32
    %225 = tpu.memref_slice %arg2[%3, %c0_i32_129] : memref<64x128xf32, #tpu.memory_space<any>> -> memref<1x128xf32, #tpu.memory_space<any>>
    %c0_i32_130 = arith.constant 0 : i32
    %c0_i32_131 = arith.constant 0 : i32
    %226 = tpu.memref_slice %arg3[%c0_i32_130, %c0_i32_131] : memref<32x128xf32, #tpu.memory_space<vmem>> -> memref<1x128xf32, #tpu.memory_space<vmem>>
    %227 = tpu.memref_slice %arg4[%c0_i32_128] : memref<32x!tpu.dma_semaphore, #tpu.memory_space<semaphore_mem>> -> memref<1x!tpu.dma_semaphore, #tpu.memory_space<semaphore_mem>>
    %228 = tpu.memref_squeeze %227 : memref<1x!tpu.dma_semaphore, #tpu.memory_space<semaphore_mem>> -> memref<!tpu.dma_semaphore, #tpu.memory_space<semaphore_mem>>
    tpu.wait_dma2 semaphore(%228 : memref<!tpu.dma_semaphore, #tpu.memory_space<semaphore_mem>>) src(%225 : memref<1x128xf32, #tpu.memory_space<any>>) dst(%226 : memref<1x128xf32, #tpu.memory_space<vmem>>)
    %c1_i32_132 = arith.constant 1 : i32
    %c0_i32_133 = arith.constant 0 : i32
    %229 = tpu.memref_slice %arg2[%6, %c0_i32_133] : memref<64x128xf32, #tpu.memory_space<any>> -> memref<1x128xf32, #tpu.memory_space<any>>
    %c1_i32_134 = arith.constant 1 : i32
    %c0_i32_135 = arith.constant 0 : i32
    %230 = tpu.memref_slice %arg3[%c1_i32_134, %c0_i32_135] : memref<32x128xf32, #tpu.memory_space<vmem>> -> memref<1x128xf32, #tpu.memory_space<vmem>>
    %231 = tpu.memref_slice %arg4[%c1_i32_132] : memref<32x!tpu.dma_semaphore, #tpu.memory_space<semaphore_mem>> -> memref<1x!tpu.dma_semaphore, #tpu.memory_space<semaphore_mem>>
    %232 = tpu.memref_squeeze %231 : memref<1x!tpu.dma_semaphore, #tpu.memory_space<semaphore_mem>> -> memref<!tpu.dma_semaphore, #tpu.memory_space<semaphore_mem>>
    tpu.wait_dma2 semaphore(%232 : memref<!tpu.dma_semaphore, #tpu.memory_space<semaphore_mem>>) src(%229 : memref<1x128xf32, #tpu.memory_space<any>>) dst(%230 : memref<1x128xf32, #tpu.memory_space<vmem>>)
    %c2_i32_136 = arith.constant 2 : i32
    %c0_i32_137 = arith.constant 0 : i32
    %233 = tpu.memref_slice %arg2[%9, %c0_i32_137] : memref<64x128xf32, #tpu.memory_space<any>> -> memref<1x128xf32, #tpu.memory_space<any>>
    %c2_i32_138 = arith.constant 2 : i32
    %c0_i32_139 = arith.constant 0 : i32
    %234 = tpu.memref_slice %arg3[%c2_i32_138, %c0_i32_139] : memref<32x128xf32, #tpu.memory_space<vmem>> -> memref<1x128xf32, #tpu.memory_space<vmem>>
    %235 = tpu.memref_slice %arg4[%c2_i32_136] : memref<32x!tpu.dma_semaphore, #tpu.memory_space<semaphore_mem>> -> memref<1x!tpu.dma_semaphore, #tpu.memory_space<semaphore_mem>>
    %236 = tpu.memref_squeeze %235 : memref<1x!tpu.dma_semaphore, #tpu.memory_space<semaphore_mem>> -> memref<!tpu.dma_semaphore, #tpu.memory_space<semaphore_mem>>
    tpu.wait_dma2 semaphore(%236 : memref<!tpu.dma_semaphore, #tpu.memory_space<semaphore_mem>>) src(%233 : memref<1x128xf32, #tpu.memory_space<any>>) dst(%234 : memref<1x128xf32, #tpu.memory_space<vmem>>)
    %c3_i32_140 = arith.constant 3 : i32
    %c0_i32_141 = arith.constant 0 : i32
    %237 = tpu.memref_slice %arg2[%12, %c0_i32_141] : memref<64x128xf32, #tpu.memory_space<any>> -> memref<1x128xf32, #tpu.memory_space<any>>
    %c3_i32_142 = arith.constant 3 : i32
    %c0_i32_143 = arith.constant 0 : i32
    %238 = tpu.memref_slice %arg3[%c3_i32_142, %c0_i32_143] : memref<32x128xf32, #tpu.memory_space<vmem>> -> memref<1x128xf32, #tpu.memory_space<vmem>>
    %239 = tpu.memref_slice %arg4[%c3_i32_140] : memref<32x!tpu.dma_semaphore, #tpu.memory_space<semaphore_mem>> -> memref<1x!tpu.dma_semaphore, #tpu.memory_space<semaphore_mem>>
    %240 = tpu.memref_squeeze %239 : memref<1x!tpu.dma_semaphore, #tpu.memory_space<semaphore_mem>> -> memref<!tpu.dma_semaphore, #tpu.memory_space<semaphore_mem>>
    tpu.wait_dma2 semaphore(%240 : memref<!tpu.dma_semaphore, #tpu.memory_space<semaphore_mem>>) src(%237 : memref<1x128xf32, #tpu.memory_space<any>>) dst(%238 : memref<1x128xf32, #tpu.memory_space<vmem>>)
    %c4_i32_144 = arith.constant 4 : i32
    %c0_i32_145 = arith.constant 0 : i32
    %241 = tpu.memref_slice %arg2[%15, %c0_i32_145] : memref<64x128xf32, #tpu.memory_space<any>> -> memref<1x128xf32, #tpu.memory_space<any>>
    %c4_i32_146 = arith.constant 4 : i32
    %c0_i32_147 = arith.constant 0 : i32
    %242 = tpu.memref_slice %arg3[%c4_i32_146, %c0_i32_147] : memref<32x128xf32, #tpu.memory_space<vmem>> -> memref<1x128xf32, #tpu.memory_space<vmem>>
    %243 = tpu.memref_slice %arg4[%c4_i32_144] : memref<32x!tpu.dma_semaphore, #tpu.memory_space<semaphore_mem>> -> memref<1x!tpu.dma_semaphore, #tpu.memory_space<semaphore_mem>>
    %244 = tpu.memref_squeeze %243 : memref<1x!tpu.dma_semaphore, #tpu.memory_space<semaphore_mem>> -> memref<!tpu.dma_semaphore, #tpu.memory_space<semaphore_mem>>
    tpu.wait_dma2 semaphore(%244 : memref<!tpu.dma_semaphore, #tpu.memory_space<semaphore_mem>>) src(%241 : memref<1x128xf32, #tpu.memory_space<any>>) dst(%242 : memref<1x128xf32, #tpu.memory_space<vmem>>)
    %c5_i32_148 = arith.constant 5 : i32
    %c0_i32_149 = arith.constant 0 : i32
    %245 = tpu.memref_slice %arg2[%18, %c0_i32_149] : memref<64x128xf32, #tpu.memory_space<any>> -> memref<1x128xf32, #tpu.memory_space<any>>
    %c5_i32_150 = arith.constant 5 : i32
    %c0_i32_151 = arith.constant 0 : i32
    %246 = tpu.memref_slice %arg3[%c5_i32_150, %c0_i32_151] : memref<32x128xf32, #tpu.memory_space<vmem>> -> memref<1x128xf32, #tpu.memory_space<vmem>>
    %247 = tpu.memref_slice %arg4[%c5_i32_148] : memref<32x!tpu.dma_semaphore, #tpu.memory_space<semaphore_mem>> -> memref<1x!tpu.dma_semaphore, #tpu.memory_space<semaphore_mem>>
    %248 = tpu.memref_squeeze %247 : memref<1x!tpu.dma_semaphore, #tpu.memory_space<semaphore_mem>> -> memref<!tpu.dma_semaphore, #tpu.memory_space<semaphore_mem>>
    tpu.wait_dma2 semaphore(%248 : memref<!tpu.dma_semaphore, #tpu.memory_space<semaphore_mem>>) src(%245 : memref<1x128xf32, #tpu.memory_space<any>>) dst(%246 : memref<1x128xf32, #tpu.memory_space<vmem>>)
    %c6_i32_152 = arith.constant 6 : i32
    %c0_i32_153 = arith.constant 0 : i32
    %249 = tpu.memref_slice %arg2[%21, %c0_i32_153] : memref<64x128xf32, #tpu.memory_space<any>> -> memref<1x128xf32, #tpu.memory_space<any>>
    %c6_i32_154 = arith.constant 6 : i32
    %c0_i32_155 = arith.constant 0 : i32
    %250 = tpu.memref_slice %arg3[%c6_i32_154, %c0_i32_155] : memref<32x128xf32, #tpu.memory_space<vmem>> -> memref<1x128xf32, #tpu.memory_space<vmem>>
    %251 = tpu.memref_slice %arg4[%c6_i32_152] : memref<32x!tpu.dma_semaphore, #tpu.memory_space<semaphore_mem>> -> memref<1x!tpu.dma_semaphore, #tpu.memory_space<semaphore_mem>>
    %252 = tpu.memref_squeeze %251 : memref<1x!tpu.dma_semaphore, #tpu.memory_space<semaphore_mem>> -> memref<!tpu.dma_semaphore, #tpu.memory_space<semaphore_mem>>
    tpu.wait_dma2 semaphore(%252 : memref<!tpu.dma_semaphore, #tpu.memory_space<semaphore_mem>>) src(%249 : memref<1x128xf32, #tpu.memory_space<any>>) dst(%250 : memref<1x128xf32, #tpu.memory_space<vmem>>)
    %c7_i32_156 = arith.constant 7 : i32
    %c0_i32_157 = arith.constant 0 : i32
    %253 = tpu.memref_slice %arg2[%24, %c0_i32_157] : memref<64x128xf32, #tpu.memory_space<any>> -> memref<1x128xf32, #tpu.memory_space<any>>
    %c7_i32_158 = arith.constant 7 : i32
    %c0_i32_159 = arith.constant 0 : i32
    %254 = tpu.memref_slice %arg3[%c7_i32_158, %c0_i32_159] : memref<32x128xf32, #tpu.memory_space<vmem>> -> memref<1x128xf32, #tpu.memory_space<vmem>>
    %255 = tpu.memref_slice %arg4[%c7_i32_156] : memref<32x!tpu.dma_semaphore, #tpu.memory_space<semaphore_mem>> -> memref<1x!tpu.dma_semaphore, #tpu.memory_space<semaphore_mem>>
    %256 = tpu.memref_squeeze %255 : memref<1x!tpu.dma_semaphore, #tpu.memory_space<semaphore_mem>> -> memref<!tpu.dma_semaphore, #tpu.memory_space<semaphore_mem>>
    tpu.wait_dma2 semaphore(%256 : memref<!tpu.dma_semaphore, #tpu.memory_space<semaphore_mem>>) src(%253 : memref<1x128xf32, #tpu.memory_space<any>>) dst(%254 : memref<1x128xf32, #tpu.memory_space<vmem>>)
    %c8_i32_160 = arith.constant 8 : i32
    %c0_i32_161 = arith.constant 0 : i32
    %257 = tpu.memref_slice %arg2[%27, %c0_i32_161] : memref<64x128xf32, #tpu.memory_space<any>> -> memref<1x128xf32, #tpu.memory_space<any>>
    %c8_i32_162 = arith.constant 8 : i32
    %c0_i32_163 = arith.constant 0 : i32
    %258 = tpu.memref_slice %arg3[%c8_i32_162, %c0_i32_163] : memref<32x128xf32, #tpu.memory_space<vmem>> -> memref<1x128xf32, #tpu.memory_space<vmem>>
    %259 = tpu.memref_slice %arg4[%c8_i32_160] : memref<32x!tpu.dma_semaphore, #tpu.memory_space<semaphore_mem>> -> memref<1x!tpu.dma_semaphore, #tpu.memory_space<semaphore_mem>>
    %260 = tpu.memref_squeeze %259 : memref<1x!tpu.dma_semaphore, #tpu.memory_space<semaphore_mem>> -> memref<!tpu.dma_semaphore, #tpu.memory_space<semaphore_mem>>
    tpu.wait_dma2 semaphore(%260 : memref<!tpu.dma_semaphore, #tpu.memory_space<semaphore_mem>>) src(%257 : memref<1x128xf32, #tpu.memory_space<any>>) dst(%258 : memref<1x128xf32, #tpu.memory_space<vmem>>)
    %c9_i32_164 = arith.constant 9 : i32
    %c0_i32_165 = arith.constant 0 : i32
    %261 = tpu.memref_slice %arg2[%30, %c0_i32_165] : memref<64x128xf32, #tpu.memory_space<any>> -> memref<1x128xf32, #tpu.memory_space<any>>
    %c9_i32_166 = arith.constant 9 : i32
    %c0_i32_167 = arith.constant 0 : i32
    %262 = tpu.memref_slice %arg3[%c9_i32_166, %c0_i32_167] : memref<32x128xf32, #tpu.memory_space<vmem>> -> memref<1x128xf32, #tpu.memory_space<vmem>>
    %263 = tpu.memref_slice %arg4[%c9_i32_164] : memref<32x!tpu.dma_semaphore, #tpu.memory_space<semaphore_mem>> -> memref<1x!tpu.dma_semaphore, #tpu.memory_space<semaphore_mem>>
    %264 = tpu.memref_squeeze %263 : memref<1x!tpu.dma_semaphore, #tpu.memory_space<semaphore_mem>> -> memref<!tpu.dma_semaphore, #tpu.memory_space<semaphore_mem>>
    tpu.wait_dma2 semaphore(%264 : memref<!tpu.dma_semaphore, #tpu.memory_space<semaphore_mem>>) src(%261 : memref<1x128xf32, #tpu.memory_space<any>>) dst(%262 : memref<1x128xf32, #tpu.memory_space<vmem>>)
    %c10_i32_168 = arith.constant 10 : i32
    %c0_i32_169 = arith.constant 0 : i32
    %265 = tpu.memref_slice %arg2[%33, %c0_i32_169] : memref<64x128xf32, #tpu.memory_space<any>> -> memref<1x128xf32, #tpu.memory_space<any>>
    %c10_i32_170 = arith.constant 10 : i32
    %c0_i32_171 = arith.constant 0 : i32
    %266 = tpu.memref_slice %arg3[%c10_i32_170, %c0_i32_171] : memref<32x128xf32, #tpu.memory_space<vmem>> -> memref<1x128xf32, #tpu.memory_space<vmem>>
    %267 = tpu.memref_slice %arg4[%c10_i32_168] : memref<32x!tpu.dma_semaphore, #tpu.memory_space<semaphore_mem>> -> memref<1x!tpu.dma_semaphore, #tpu.memory_space<semaphore_mem>>
    %268 = tpu.memref_squeeze %267 : memref<1x!tpu.dma_semaphore, #tpu.memory_space<semaphore_mem>> -> memref<!tpu.dma_semaphore, #tpu.memory_space<semaphore_mem>>
    tpu.wait_dma2 semaphore(%268 : memref<!tpu.dma_semaphore, #tpu.memory_space<semaphore_mem>>) src(%265 : memref<1x128xf32, #tpu.memory_space<any>>) dst(%266 : memref<1x128xf32, #tpu.memory_space<vmem>>)
    %c11_i32_172 = arith.constant 11 : i32
    %c0_i32_173 = arith.constant 0 : i32
    %269 = tpu.memref_slice %arg2[%36, %c0_i32_173] : memref<64x128xf32, #tpu.memory_space<any>> -> memref<1x128xf32, #tpu.memory_space<any>>
    %c11_i32_174 = arith.constant 11 : i32
    %c0_i32_175 = arith.constant 0 : i32
    %270 = tpu.memref_slice %arg3[%c11_i32_174, %c0_i32_175] : memref<32x128xf32, #tpu.memory_space<vmem>> -> memref<1x128xf32, #tpu.memory_space<vmem>>
    %271 = tpu.memref_slice %arg4[%c11_i32_172] : memref<32x!tpu.dma_semaphore, #tpu.memory_space<semaphore_mem>> -> memref<1x!tpu.dma_semaphore, #tpu.memory_space<semaphore_mem>>
    %272 = tpu.memref_squeeze %271 : memref<1x!tpu.dma_semaphore, #tpu.memory_space<semaphore_mem>> -> memref<!tpu.dma_semaphore, #tpu.memory_space<semaphore_mem>>
    tpu.wait_dma2 semaphore(%272 : memref<!tpu.dma_semaphore, #tpu.memory_space<semaphore_mem>>) src(%269 : memref<1x128xf32, #tpu.memory_space<any>>) dst(%270 : memref<1x128xf32, #tpu.memory_space<vmem>>)
    %c12_i32_176 = arith.constant 12 : i32
    %c0_i32_177 = arith.constant 0 : i32
    %273 = tpu.memref_slice %arg2[%39, %c0_i32_177] : memref<64x128xf32, #tpu.memory_space<any>> -> memref<1x128xf32, #tpu.memory_space<any>>
    %c12_i32_178 = arith.constant 12 : i32
    %c0_i32_179 = arith.constant 0 : i32
    %274 = tpu.memref_slice %arg3[%c12_i32_178, %c0_i32_179] : memref<32x128xf32, #tpu.memory_space<vmem>> -> memref<1x128xf32, #tpu.memory_space<vmem>>
    %275 = tpu.memref_slice %arg4[%c12_i32_176] : memref<32x!tpu.dma_semaphore, #tpu.memory_space<semaphore_mem>> -> memref<1x!tpu.dma_semaphore, #tpu.memory_space<semaphore_mem>>
    %276 = tpu.memref_squeeze %275 : memref<1x!tpu.dma_semaphore, #tpu.memory_space<semaphore_mem>> -> memref<!tpu.dma_semaphore, #tpu.memory_space<semaphore_mem>>
    tpu.wait_dma2 semaphore(%276 : memref<!tpu.dma_semaphore, #tpu.memory_space<semaphore_mem>>) src(%273 : memref<1x128xf32, #tpu.memory_space<any>>) dst(%274 : memref<1x128xf32, #tpu.memory_space<vmem>>)
    %c13_i32_180 = arith.constant 13 : i32
    %c0_i32_181 = arith.constant 0 : i32
    %277 = tpu.memref_slice %arg2[%42, %c0_i32_181] : memref<64x128xf32, #tpu.memory_space<any>> -> memref<1x128xf32, #tpu.memory_space<any>>
    %c13_i32_182 = arith.constant 13 : i32
    %c0_i32_183 = arith.constant 0 : i32
    %278 = tpu.memref_slice %arg3[%c13_i32_182, %c0_i32_183] : memref<32x128xf32, #tpu.memory_space<vmem>> -> memref<1x128xf32, #tpu.memory_space<vmem>>
    %279 = tpu.memref_slice %arg4[%c13_i32_180] : memref<32x!tpu.dma_semaphore, #tpu.memory_space<semaphore_mem>> -> memref<1x!tpu.dma_semaphore, #tpu.memory_space<semaphore_mem>>
    %280 = tpu.memref_squeeze %279 : memref<1x!tpu.dma_semaphore, #tpu.memory_space<semaphore_mem>> -> memref<!tpu.dma_semaphore, #tpu.memory_space<semaphore_mem>>
    tpu.wait_dma2 semaphore(%280 : memref<!tpu.dma_semaphore, #tpu.memory_space<semaphore_mem>>) src(%277 : memref<1x128xf32, #tpu.memory_space<any>>) dst(%278 : memref<1x128xf32, #tpu.memory_space<vmem>>)
    %c14_i32_184 = arith.constant 14 : i32
    %c0_i32_185 = arith.constant 0 : i32
    %281 = tpu.memref_slice %arg2[%45, %c0_i32_185] : memref<64x128xf32, #tpu.memory_space<any>> -> memref<1x128xf32, #tpu.memory_space<any>>
    %c14_i32_186 = arith.constant 14 : i32
    %c0_i32_187 = arith.constant 0 : i32
    %282 = tpu.memref_slice %arg3[%c14_i32_186, %c0_i32_187] : memref<32x128xf32, #tpu.memory_space<vmem>> -> memref<1x128xf32, #tpu.memory_space<vmem>>
    %283 = tpu.memref_slice %arg4[%c14_i32_184] : memref<32x!tpu.dma_semaphore, #tpu.memory_space<semaphore_mem>> -> memref<1x!tpu.dma_semaphore, #tpu.memory_space<semaphore_mem>>
    %284 = tpu.memref_squeeze %283 : memref<1x!tpu.dma_semaphore, #tpu.memory_space<semaphore_mem>> -> memref<!tpu.dma_semaphore, #tpu.memory_space<semaphore_mem>>
    tpu.wait_dma2 semaphore(%284 : memref<!tpu.dma_semaphore, #tpu.memory_space<semaphore_mem>>) src(%281 : memref<1x128xf32, #tpu.memory_space<any>>) dst(%282 : memref<1x128xf32, #tpu.memory_space<vmem>>)
    %c15_i32_188 = arith.constant 15 : i32
    %c0_i32_189 = arith.constant 0 : i32
    %285 = tpu.memref_slice %arg2[%48, %c0_i32_189] : memref<64x128xf32, #tpu.memory_space<any>> -> memref<1x128xf32, #tpu.memory_space<any>>
    %c15_i32_190 = arith.constant 15 : i32
    %c0_i32_191 = arith.constant 0 : i32
    %286 = tpu.memref_slice %arg3[%c15_i32_190, %c0_i32_191] : memref<32x128xf32, #tpu.memory_space<vmem>> -> memref<1x128xf32, #tpu.memory_space<vmem>>
    %287 = tpu.memref_slice %arg4[%c15_i32_188] : memref<32x!tpu.dma_semaphore, #tpu.memory_space<semaphore_mem>> -> memref<1x!tpu.dma_semaphore, #tpu.memory_space<semaphore_mem>>
    %288 = tpu.memref_squeeze %287 : memref<1x!tpu.dma_semaphore, #tpu.memory_space<semaphore_mem>> -> memref<!tpu.dma_semaphore, #tpu.memory_space<semaphore_mem>>
    tpu.wait_dma2 semaphore(%288 : memref<!tpu.dma_semaphore, #tpu.memory_space<semaphore_mem>>) src(%285 : memref<1x128xf32, #tpu.memory_space<any>>) dst(%286 : memref<1x128xf32, #tpu.memory_space<vmem>>)
    %c16_i32_192 = arith.constant 16 : i32
    %c0_i32_193 = arith.constant 0 : i32
    %289 = tpu.memref_slice %arg2[%51, %c0_i32_193] : memref<64x128xf32, #tpu.memory_space<any>> -> memref<1x128xf32, #tpu.memory_space<any>>
    %c16_i32_194 = arith.constant 16 : i32
    %c0_i32_195 = arith.constant 0 : i32
    %290 = tpu.memref_slice %arg3[%c16_i32_194, %c0_i32_195] : memref<32x128xf32, #tpu.memory_space<vmem>> -> memref<1x128xf32, #tpu.memory_space<vmem>>
    %291 = tpu.memref_slice %arg4[%c16_i32_192] : memref<32x!tpu.dma_semaphore, #tpu.memory_space<semaphore_mem>> -> memref<1x!tpu.dma_semaphore, #tpu.memory_space<semaphore_mem>>
    %292 = tpu.memref_squeeze %291 : memref<1x!tpu.dma_semaphore, #tpu.memory_space<semaphore_mem>> -> memref<!tpu.dma_semaphore, #tpu.memory_space<semaphore_mem>>
    tpu.wait_dma2 semaphore(%292 : memref<!tpu.dma_semaphore, #tpu.memory_space<semaphore_mem>>) src(%289 : memref<1x128xf32, #tpu.memory_space<any>>) dst(%290 : memref<1x128xf32, #tpu.memory_space<vmem>>)
    %c17_i32_196 = arith.constant 17 : i32
    %c0_i32_197 = arith.constant 0 : i32
    %293 = tpu.memref_slice %arg2[%54, %c0_i32_197] : memref<64x128xf32, #tpu.memory_space<any>> -> memref<1x128xf32, #tpu.memory_space<any>>
    %c17_i32_198 = arith.constant 17 : i32
    %c0_i32_199 = arith.constant 0 : i32
    %294 = tpu.memref_slice %arg3[%c17_i32_198, %c0_i32_199] : memref<32x128xf32, #tpu.memory_space<vmem>> -> memref<1x128xf32, #tpu.memory_space<vmem>>
    %295 = tpu.memref_slice %arg4[%c17_i32_196] : memref<32x!tpu.dma_semaphore, #tpu.memory_space<semaphore_mem>> -> memref<1x!tpu.dma_semaphore, #tpu.memory_space<semaphore_mem>>
    %296 = tpu.memref_squeeze %295 : memref<1x!tpu.dma_semaphore, #tpu.memory_space<semaphore_mem>> -> memref<!tpu.dma_semaphore, #tpu.memory_space<semaphore_mem>>
    tpu.wait_dma2 semaphore(%296 : memref<!tpu.dma_semaphore, #tpu.memory_space<semaphore_mem>>) src(%293 : memref<1x128xf32, #tpu.memory_space<any>>) dst(%294 : memref<1x128xf32, #tpu.memory_space<vmem>>)
    %c18_i32_200 = arith.constant 18 : i32
    %c0_i32_201 = arith.constant 0 : i32
    %297 = tpu.memref_slice %arg2[%57, %c0_i32_201] : memref<64x128xf32, #tpu.memory_space<any>> -> memref<1x128xf32, #tpu.memory_space<any>>
    %c18_i32_202 = arith.constant 18 : i32
    %c0_i32_203 = arith.constant 0 : i32
    %298 = tpu.memref_slice %arg3[%c18_i32_202, %c0_i32_203] : memref<32x128xf32, #tpu.memory_space<vmem>> -> memref<1x128xf32, #tpu.memory_space<vmem>>
    %299 = tpu.memref_slice %arg4[%c18_i32_200] : memref<32x!tpu.dma_semaphore, #tpu.memory_space<semaphore_mem>> -> memref<1x!tpu.dma_semaphore, #tpu.memory_space<semaphore_mem>>
    %300 = tpu.memref_squeeze %299 : memref<1x!tpu.dma_semaphore, #tpu.memory_space<semaphore_mem>> -> memref<!tpu.dma_semaphore, #tpu.memory_space<semaphore_mem>>
    tpu.wait_dma2 semaphore(%300 : memref<!tpu.dma_semaphore, #tpu.memory_space<semaphore_mem>>) src(%297 : memref<1x128xf32, #tpu.memory_space<any>>) dst(%298 : memref<1x128xf32, #tpu.memory_space<vmem>>)
    %c19_i32_204 = arith.constant 19 : i32
    %c0_i32_205 = arith.constant 0 : i32
    %301 = tpu.memref_slice %arg2[%60, %c0_i32_205] : memref<64x128xf32, #tpu.memory_space<any>> -> memref<1x128xf32, #tpu.memory_space<any>>
    %c19_i32_206 = arith.constant 19 : i32
    %c0_i32_207 = arith.constant 0 : i32
    %302 = tpu.memref_slice %arg3[%c19_i32_206, %c0_i32_207] : memref<32x128xf32, #tpu.memory_space<vmem>> -> memref<1x128xf32, #tpu.memory_space<vmem>>
    %303 = tpu.memref_slice %arg4[%c19_i32_204] : memref<32x!tpu.dma_semaphore, #tpu.memory_space<semaphore_mem>> -> memref<1x!tpu.dma_semaphore, #tpu.memory_space<semaphore_mem>>
    %304 = tpu.memref_squeeze %303 : memref<1x!tpu.dma_semaphore, #tpu.memory_space<semaphore_mem>> -> memref<!tpu.dma_semaphore, #tpu.memory_space<semaphore_mem>>
    tpu.wait_dma2 semaphore(%304 : memref<!tpu.dma_semaphore, #tpu.memory_space<semaphore_mem>>) src(%301 : memref<1x128xf32, #tpu.memory_space<any>>) dst(%302 : memref<1x128xf32, #tpu.memory_space<vmem>>)
    %c20_i32_208 = arith.constant 20 : i32
    %c0_i32_209 = arith.constant 0 : i32
    %305 = tpu.memref_slice %arg2[%63, %c0_i32_209] : memref<64x128xf32, #tpu.memory_space<any>> -> memref<1x128xf32, #tpu.memory_space<any>>
    %c20_i32_210 = arith.constant 20 : i32
    %c0_i32_211 = arith.constant 0 : i32
    %306 = tpu.memref_slice %arg3[%c20_i32_210, %c0_i32_211] : memref<32x128xf32, #tpu.memory_space<vmem>> -> memref<1x128xf32, #tpu.memory_space<vmem>>
    %307 = tpu.memref_slice %arg4[%c20_i32_208] : memref<32x!tpu.dma_semaphore, #tpu.memory_space<semaphore_mem>> -> memref<1x!tpu.dma_semaphore, #tpu.memory_space<semaphore_mem>>
    %308 = tpu.memref_squeeze %307 : memref<1x!tpu.dma_semaphore, #tpu.memory_space<semaphore_mem>> -> memref<!tpu.dma_semaphore, #tpu.memory_space<semaphore_mem>>
    tpu.wait_dma2 semaphore(%308 : memref<!tpu.dma_semaphore, #tpu.memory_space<semaphore_mem>>) src(%305 : memref<1x128xf32, #tpu.memory_space<any>>) dst(%306 : memref<1x128xf32, #tpu.memory_space<vmem>>)
    %c21_i32_212 = arith.constant 21 : i32
    %c0_i32_213 = arith.constant 0 : i32
    %309 = tpu.memref_slice %arg2[%66, %c0_i32_213] : memref<64x128xf32, #tpu.memory_space<any>> -> memref<1x128xf32, #tpu.memory_space<any>>
    %c21_i32_214 = arith.constant 21 : i32
    %c0_i32_215 = arith.constant 0 : i32
    %310 = tpu.memref_slice %arg3[%c21_i32_214, %c0_i32_215] : memref<32x128xf32, #tpu.memory_space<vmem>> -> memref<1x128xf32, #tpu.memory_space<vmem>>
    %311 = tpu.memref_slice %arg4[%c21_i32_212] : memref<32x!tpu.dma_semaphore, #tpu.memory_space<semaphore_mem>> -> memref<1x!tpu.dma_semaphore, #tpu.memory_space<semaphore_mem>>
    %312 = tpu.memref_squeeze %311 : memref<1x!tpu.dma_semaphore, #tpu.memory_space<semaphore_mem>> -> memref<!tpu.dma_semaphore, #tpu.memory_space<semaphore_mem>>
    tpu.wait_dma2 semaphore(%312 : memref<!tpu.dma_semaphore, #tpu.memory_space<semaphore_mem>>) src(%309 : memref<1x128xf32, #tpu.memory_space<any>>) dst(%310 : memref<1x128xf32, #tpu.memory_space<vmem>>)
    %c22_i32_216 = arith.constant 22 : i32
    %c0_i32_217 = arith.constant 0 : i32
    %313 = tpu.memref_slice %arg2[%69, %c0_i32_217] : memref<64x128xf32, #tpu.memory_space<any>> -> memref<1x128xf32, #tpu.memory_space<any>>
    %c22_i32_218 = arith.constant 22 : i32
    %c0_i32_219 = arith.constant 0 : i32
    %314 = tpu.memref_slice %arg3[%c22_i32_218, %c0_i32_219] : memref<32x128xf32, #tpu.memory_space<vmem>> -> memref<1x128xf32, #tpu.memory_space<vmem>>
    %315 = tpu.memref_slice %arg4[%c22_i32_216] : memref<32x!tpu.dma_semaphore, #tpu.memory_space<semaphore_mem>> -> memref<1x!tpu.dma_semaphore, #tpu.memory_space<semaphore_mem>>
    %316 = tpu.memref_squeeze %315 : memref<1x!tpu.dma_semaphore, #tpu.memory_space<semaphore_mem>> -> memref<!tpu.dma_semaphore, #tpu.memory_space<semaphore_mem>>
    tpu.wait_dma2 semaphore(%316 : memref<!tpu.dma_semaphore, #tpu.memory_space<semaphore_mem>>) src(%313 : memref<1x128xf32, #tpu.memory_space<any>>) dst(%314 : memref<1x128xf32, #tpu.memory_space<vmem>>)
    %c23_i32_220 = arith.constant 23 : i32
    %c0_i32_221 = arith.constant 0 : i32
    %317 = tpu.memref_slice %arg2[%72, %c0_i32_221] : memref<64x128xf32, #tpu.memory_space<any>> -> memref<1x128xf32, #tpu.memory_space<any>>
    %c23_i32_222 = arith.constant 23 : i32
    %c0_i32_223 = arith.constant 0 : i32
    %318 = tpu.memref_slice %arg3[%c23_i32_222, %c0_i32_223] : memref<32x128xf32, #tpu.memory_space<vmem>> -> memref<1x128xf32, #tpu.memory_space<vmem>>
    %319 = tpu.memref_slice %arg4[%c23_i32_220] : memref<32x!tpu.dma_semaphore, #tpu.memory_space<semaphore_mem>> -> memref<1x!tpu.dma_semaphore, #tpu.memory_space<semaphore_mem>>
    %320 = tpu.memref_squeeze %319 : memref<1x!tpu.dma_semaphore, #tpu.memory_space<semaphore_mem>> -> memref<!tpu.dma_semaphore, #tpu.memory_space<semaphore_mem>>
    tpu.wait_dma2 semaphore(%320 : memref<!tpu.dma_semaphore, #tpu.memory_space<semaphore_mem>>) src(%317 : memref<1x128xf32, #tpu.memory_space<any>>) dst(%318 : memref<1x128xf32, #tpu.memory_space<vmem>>)
    %c24_i32_224 = arith.constant 24 : i32
    %c0_i32_225 = arith.constant 0 : i32
    %321 = tpu.memref_slice %arg2[%75, %c0_i32_225] : memref<64x128xf32, #tpu.memory_space<any>> -> memref<1x128xf32, #tpu.memory_space<any>>
    %c24_i32_226 = arith.constant 24 : i32
    %c0_i32_227 = arith.constant 0 : i32
    %322 = tpu.memref_slice %arg3[%c24_i32_226, %c0_i32_227] : memref<32x128xf32, #tpu.memory_space<vmem>> -> memref<1x128xf32, #tpu.memory_space<vmem>>
    %323 = tpu.memref_slice %arg4[%c24_i32_224] : memref<32x!tpu.dma_semaphore, #tpu.memory_space<semaphore_mem>> -> memref<1x!tpu.dma_semaphore, #tpu.memory_space<semaphore_mem>>
    %324 = tpu.memref_squeeze %323 : memref<1x!tpu.dma_semaphore, #tpu.memory_space<semaphore_mem>> -> memref<!tpu.dma_semaphore, #tpu.memory_space<semaphore_mem>>
    tpu.wait_dma2 semaphore(%324 : memref<!tpu.dma_semaphore, #tpu.memory_space<semaphore_mem>>) src(%321 : memref<1x128xf32, #tpu.memory_space<any>>) dst(%322 : memref<1x128xf32, #tpu.memory_space<vmem>>)
    %c25_i32_228 = arith.constant 25 : i32
    %c0_i32_229 = arith.constant 0 : i32
    %325 = tpu.memref_slice %arg2[%78, %c0_i32_229] : memref<64x128xf32, #tpu.memory_space<any>> -> memref<1x128xf32, #tpu.memory_space<any>>
    %c25_i32_230 = arith.constant 25 : i32
    %c0_i32_231 = arith.constant 0 : i32
    %326 = tpu.memref_slice %arg3[%c25_i32_230, %c0_i32_231] : memref<32x128xf32, #tpu.memory_space<vmem>> -> memref<1x128xf32, #tpu.memory_space<vmem>>
    %327 = tpu.memref_slice %arg4[%c25_i32_228] : memref<32x!tpu.dma_semaphore, #tpu.memory_space<semaphore_mem>> -> memref<1x!tpu.dma_semaphore, #tpu.memory_space<semaphore_mem>>
    %328 = tpu.memref_squeeze %327 : memref<1x!tpu.dma_semaphore, #tpu.memory_space<semaphore_mem>> -> memref<!tpu.dma_semaphore, #tpu.memory_space<semaphore_mem>>
    tpu.wait_dma2 semaphore(%328 : memref<!tpu.dma_semaphore, #tpu.memory_space<semaphore_mem>>) src(%325 : memref<1x128xf32, #tpu.memory_space<any>>) dst(%326 : memref<1x128xf32, #tpu.memory_space<vmem>>)
    %c26_i32_232 = arith.constant 26 : i32
    %c0_i32_233 = arith.constant 0 : i32
    %329 = tpu.memref_slice %arg2[%81, %c0_i32_233] : memref<64x128xf32, #tpu.memory_space<any>> -> memref<1x128xf32, #tpu.memory_space<any>>
    %c26_i32_234 = arith.constant 26 : i32
    %c0_i32_235 = arith.constant 0 : i32
    %330 = tpu.memref_slice %arg3[%c26_i32_234, %c0_i32_235] : memref<32x128xf32, #tpu.memory_space<vmem>> -> memref<1x128xf32, #tpu.memory_space<vmem>>
    %331 = tpu.memref_slice %arg4[%c26_i32_232] : memref<32x!tpu.dma_semaphore, #tpu.memory_space<semaphore_mem>> -> memref<1x!tpu.dma_semaphore, #tpu.memory_space<semaphore_mem>>
    %332 = tpu.memref_squeeze %331 : memref<1x!tpu.dma_semaphore, #tpu.memory_space<semaphore_mem>> -> memref<!tpu.dma_semaphore, #tpu.memory_space<semaphore_mem>>
    tpu.wait_dma2 semaphore(%332 : memref<!tpu.dma_semaphore, #tpu.memory_space<semaphore_mem>>) src(%329 : memref<1x128xf32, #tpu.memory_space<any>>) dst(%330 : memref<1x128xf32, #tpu.memory_space<vmem>>)
    %c27_i32_236 = arith.constant 27 : i32
    %c0_i32_237 = arith.constant 0 : i32
    %333 = tpu.memref_slice %arg2[%84, %c0_i32_237] : memref<64x128xf32, #tpu.memory_space<any>> -> memref<1x128xf32, #tpu.memory_space<any>>
    %c27_i32_238 = arith.constant 27 : i32
    %c0_i32_239 = arith.constant 0 : i32
    %334 = tpu.memref_slice %arg3[%c27_i32_238, %c0_i32_239] : memref<32x128xf32, #tpu.memory_space<vmem>> -> memref<1x128xf32, #tpu.memory_space<vmem>>
    %335 = tpu.memref_slice %arg4[%c27_i32_236] : memref<32x!tpu.dma_semaphore, #tpu.memory_space<semaphore_mem>> -> memref<1x!tpu.dma_semaphore, #tpu.memory_space<semaphore_mem>>
    %336 = tpu.memref_squeeze %335 : memref<1x!tpu.dma_semaphore, #tpu.memory_space<semaphore_mem>> -> memref<!tpu.dma_semaphore, #tpu.memory_space<semaphore_mem>>
    tpu.wait_dma2 semaphore(%336 : memref<!tpu.dma_semaphore, #tpu.memory_space<semaphore_mem>>) src(%333 : memref<1x128xf32, #tpu.memory_space<any>>) dst(%334 : memref<1x128xf32, #tpu.memory_space<vmem>>)
    %c28_i32_240 = arith.constant 28 : i32
    %c0_i32_241 = arith.constant 0 : i32
    %337 = tpu.memref_slice %arg2[%87, %c0_i32_241] : memref<64x128xf32, #tpu.memory_space<any>> -> memref<1x128xf32, #tpu.memory_space<any>>
    %c28_i32_242 = arith.constant 28 : i32
    %c0_i32_243 = arith.constant 0 : i32
    %338 = tpu.memref_slice %arg3[%c28_i32_242, %c0_i32_243] : memref<32x128xf32, #tpu.memory_space<vmem>> -> memref<1x128xf32, #tpu.memory_space<vmem>>
    %339 = tpu.memref_slice %arg4[%c28_i32_240] : memref<32x!tpu.dma_semaphore, #tpu.memory_space<semaphore_mem>> -> memref<1x!tpu.dma_semaphore, #tpu.memory_space<semaphore_mem>>
    %340 = tpu.memref_squeeze %339 : memref<1x!tpu.dma_semaphore, #tpu.memory_space<semaphore_mem>> -> memref<!tpu.dma_semaphore, #tpu.memory_space<semaphore_mem>>
    tpu.wait_dma2 semaphore(%340 : memref<!tpu.dma_semaphore, #tpu.memory_space<semaphore_mem>>) src(%337 : memref<1x128xf32, #tpu.memory_space<any>>) dst(%338 : memref<1x128xf32, #tpu.memory_space<vmem>>)
    %c29_i32_244 = arith.constant 29 : i32
    %c0_i32_245 = arith.constant 0 : i32
    %341 = tpu.memref_slice %arg2[%90, %c0_i32_245] : memref<64x128xf32, #tpu.memory_space<any>> -> memref<1x128xf32, #tpu.memory_space<any>>
    %c29_i32_246 = arith.constant 29 : i32
    %c0_i32_247 = arith.constant 0 : i32
    %342 = tpu.memref_slice %arg3[%c29_i32_246, %c0_i32_247] : memref<32x128xf32, #tpu.memory_space<vmem>> -> memref<1x128xf32, #tpu.memory_space<vmem>>
    %343 = tpu.memref_slice %arg4[%c29_i32_244] : memref<32x!tpu.dma_semaphore, #tpu.memory_space<semaphore_mem>> -> memref<1x!tpu.dma_semaphore, #tpu.memory_space<semaphore_mem>>
    %344 = tpu.memref_squeeze %343 : memref<1x!tpu.dma_semaphore, #tpu.memory_space<semaphore_mem>> -> memref<!tpu.dma_semaphore, #tpu.memory_space<semaphore_mem>>
    tpu.wait_dma2 semaphore(%344 : memref<!tpu.dma_semaphore, #tpu.memory_space<semaphore_mem>>) src(%341 : memref<1x128xf32, #tpu.memory_space<any>>) dst(%342 : memref<1x128xf32, #tpu.memory_space<vmem>>)
    %c30_i32_248 = arith.constant 30 : i32
    %c0_i32_249 = arith.constant 0 : i32
    %345 = tpu.memref_slice %arg2[%93, %c0_i32_249] : memref<64x128xf32, #tpu.memory_space<any>> -> memref<1x128xf32, #tpu.memory_space<any>>
    %c30_i32_250 = arith.constant 30 : i32
    %c0_i32_251 = arith.constant 0 : i32
    %346 = tpu.memref_slice %arg3[%c30_i32_250, %c0_i32_251] : memref<32x128xf32, #tpu.memory_space<vmem>> -> memref<1x128xf32, #tpu.memory_space<vmem>>
    %347 = tpu.memref_slice %arg4[%c30_i32_248] : memref<32x!tpu.dma_semaphore, #tpu.memory_space<semaphore_mem>> -> memref<1x!tpu.dma_semaphore, #tpu.memory_space<semaphore_mem>>
    %348 = tpu.memref_squeeze %347 : memref<1x!tpu.dma_semaphore, #tpu.memory_space<semaphore_mem>> -> memref<!tpu.dma_semaphore, #tpu.memory_space<semaphore_mem>>
    tpu.wait_dma2 semaphore(%348 : memref<!tpu.dma_semaphore, #tpu.memory_space<semaphore_mem>>) src(%345 : memref<1x128xf32, #tpu.memory_space<any>>) dst(%346 : memref<1x128xf32, #tpu.memory_space<vmem>>)
    %c31_i32_252 = arith.constant 31 : i32
    %c0_i32_253 = arith.constant 0 : i32
    %349 = tpu.memref_slice %arg2[%96, %c0_i32_253] : memref<64x128xf32, #tpu.memory_space<any>> -> memref<1x128xf32, #tpu.memory_space<any>>
    %c31_i32_254 = arith.constant 31 : i32
    %c0_i32_255 = arith.constant 0 : i32
    %350 = tpu.memref_slice %arg3[%c31_i32_254, %c0_i32_255] : memref<32x128xf32, #tpu.memory_space<vmem>> -> memref<1x128xf32, #tpu.memory_space<vmem>>
    %351 = tpu.memref_slice %arg4[%c31_i32_252] : memref<32x!tpu.dma_semaphore, #tpu.memory_space<semaphore_mem>> -> memref<1x!tpu.dma_semaphore, #tpu.memory_space<semaphore_mem>>
    %352 = tpu.memref_squeeze %351 : memref<1x!tpu.dma_semaphore, #tpu.memory_space<semaphore_mem>> -> memref<!tpu.dma_semaphore, #tpu.memory_space<semaphore_mem>>
    tpu.wait_dma2 semaphore(%352 : memref<!tpu.dma_semaphore, #tpu.memory_space<semaphore_mem>>) src(%349 : memref<1x128xf32, #tpu.memory_space<any>>) dst(%350 : memref<1x128xf32, #tpu.memory_space<vmem>>)
    return
  }
  func.func @transform_1(%arg0: i32, %arg1: memref<32xi32, #tpu.memory_space<smem>>) -> (i32, i32) {
    %c0_i32 = arith.constant 0 : i32
    %c0_i32_0 = arith.constant 0 : i32
    return %arg0, %c0_i32 : i32, i32
  }
}

</mosaic_0001>

<bundles_post_ra>
// kernel: tpu_custom_call.1
= control target key start
LH: loop header
LB: loop body
LE: loop exit
PB: predicated region body
PF: predicated region fallthrough
CT: control target
= control target key end

     0   :  { %s2517_s0 = inlined_call_operand.hbm [shape: s32[32], index: 0, kind: input, shape index: {}]   ;;  %s2518_s1 = inlined_call_operand.hbm [shape: f32[64,128], index: 1, kind: input, shape index: {}]   ;;  %s2519_s2 = inlined_call_operand.hbm [shape: f32[32,128], index: 2, kind: output, shape index: {}]  }
   0x1   :  { %s1052_s11 = scalar_lea.hbm %s2517_s0, 16 }
   0x2   :  { %p1053_p0 = scmp.ne.s32.totalorder %s2517_s0, %s1052_s11  ;;  %p1056_p1 = scmp.lt.u32.totalorder %s1052_s11, %s2517_s0 }
   0x4   :  { %p1058_p2 = pnand %p1056_p1, %p1053_p0 }
   0x6   :  { %1061 = shalt.err (!%p1058_p2)  }
   0x7   :  { %s1920_s16 = smov [#allocation4]  }
   0x8   :  { %8 = dma.hbm_to_smem %s2517_s0, 16, %s1920_s16, [#allocation3] }
   0x9   :  { %1852 = dma.done.wait [#allocation3], 16 }
   0xa   :  { %1853 = vsyncadd [#allocation3], 4294967280 }
   0xb   :  { %10 = sfence }
   0xc   :  { %11 = vsyncpa [#allocation6], 0  ;;  %s13_s19 = sld [smem:[#allocation4]]  ;;  %s1921_s20 = smov [#allocation5]  }
   0xd   :  { %s85_s21 = sshll.u32 %s1921_s20, 4  ;;  %s1982_s22 = sld [smem:[#allocation4 + $0x1]]  ;;  %s1984_s21 = int_to_ptr.vmem [resolvable:$true] %s85_s21 }
   0xe   :  { %s1922_s23 = smov [#allocation5 + $0x1]   ;;  %s1986_s25 = sld [smem:[#allocation4 + $0x2]] }
   0xf   :  { %s100_s24 = sshll.u32 %s1922_s23, 4  ;;  %s1923_s26 = smov [#allocation5 + $0x2]   ;;  %s1988_s24 = int_to_ptr.vmem [resolvable:$true] %s100_s24 }
  0x10   :  { %s115_s0 = sshll.u32 %s1923_s26, 4  ;;  %s1990_s27 = sld [smem:[#allocation4 + $0x3]]  ;;  %s1992_s0 = int_to_ptr.vmem [resolvable:$true] %s115_s0 }
  0x11   :  { %s2001_s8 = scalar_lea.hbm %s2518_s1, 1024 }
  0x12   :  { %s953_s28 = sshll.u32 %s13_s19, 4 }
  0x13   :  { %s77_s3 = scalar_lea.hbm %s2518_s1, %s953_s28  ;;  %s954_s4 = sshll.u32 %s1982_s22, 4 }
  0x14   :  { %s1062_s5 = scalar_lea.hbm %s77_s3, 16  ;;  %p1065_p4 = scmp.lt.u32.totalorder %s77_s3, %s2518_s1 }
  0x15   :  { %p1063_p3 = scmp.ne.s32.totalorder %s77_s3, %s1062_s5  ;;  %p1066_p5 = scmp.lt.u32.totalorder %s2001_s8, %s1062_s5 }
  0x16   :  { %p1068_p7 = scmp.lt.u32.totalorder %s1062_s5, %s77_s3 }
  0x17   :  { %p1067_p6 = por %p1066_p5, %p1065_p4 }
  0x19   :  { %p1069_p8 = por %p1068_p7, %p1067_p6 }
  0x1b   :  { %p1070_p9 = pnand %p1069_p8, %p1063_p3 }
  0x1d   :  { %1073 = shalt.err (!%p1070_p9)  }
  0x1e   :  { %s1074_s11 = scalar_lea.vmem %s1984_s21, 16  ;;  %s2010_s12 = scalar_lea.vmem %s1984_s21, 512 }
  0x1f   :  { %p1075_p10 = scmp.ne.s32.totalorder %s1984_s21, %s1074_s11  ;;  %p1079_p11 = scmp.lt.s32.totalorder %s1984_s21, %s1984_s21 }
  0x20   :  { %p1080_p12 = scmp.lt.s32.totalorder %s2010_s12, %s1074_s11 }
  0x22   :  { %p1081_p13 = por %p1080_p12, %p1079_p11 }
  0x24   :  { %p1082_p0 = pnand %p1081_p13, %p1075_p10 }
  0x26   :  { %1085 = shalt.err (!%p1082_p0)  }
  0x27   :  { %88 = dma.hbm_to_vmem [thread:$0]  %s77_s3, 16, %s1984_s21, [#allocation2] }
  0x28   :  { %s90_s15 = scalar_lea.hbm %s2518_s1, %s954_s4  ;;  %s955_s16 = sshll.u32 %s1986_s25, 4 }
  0x29   :  { %s1086_s17 = scalar_lea.hbm %s90_s15, 16  ;;  %p1089_p2 = scmp.lt.u32.totalorder %s90_s15, %s2518_s1 }
  0x2a   :  { %p1087_p1 = scmp.ne.s32.totalorder %s90_s15, %s1086_s17  ;;  %p1090_p3 = scmp.lt.u32.totalorder %s2001_s8, %s1086_s17 }
  0x2b   :  { %p1092_p5 = scmp.lt.u32.totalorder %s1086_s17, %s90_s15 }
  0x2c   :  { %p1091_p4 = por %p1090_p3, %p1089_p2 }
  0x2e   :  { %p1093_p6 = por %p1092_p5, %p1091_p4 }
  0x30   :  { %p1094_p7 = pnand %p1093_p6, %p1087_p1 }
  0x32   :  { %1097 = shalt.err (!%p1094_p7)  }
  0x33   :  { %s1098_s20 = scalar_lea.vmem %s1988_s24, 16  ;;  %p1103_p9 = scmp.lt.s32.totalorder %s1988_s24, %s1984_s21 }
  0x34   :  { %p1099_p8 = scmp.ne.s32.totalorder %s1988_s24, %s1098_s20  ;;  %p1104_p10 = scmp.lt.s32.totalorder %s2010_s12, %s1098_s20 }
  0x36   :  { %p1105_p12 = por %p1104_p10, %p1103_p9 }
  0x38   :  { %p1106_p13 = pnand %p1105_p12, %p1099_p8 }
  0x3a   :  { %1109 = shalt.err (!%p1106_p13)  }
  0x3b   :  { %103 = dma.hbm_to_vmem [thread:$0]  %s90_s15, 16, %s1988_s24, [#allocation2 + $0x1] }
  0x3c   :  { %s105_s25 = scalar_lea.hbm %s2518_s1, %s955_s16  ;;  %s956_s26 = sshll.u32 %s1990_s27, 4 }
  0x3d   :  { %s1110_s28 = scalar_lea.hbm %s105_s25, 16  ;;  %p1113_p1 = scmp.lt.u32.totalorder %s105_s25, %s2518_s1 }
  0x3e   :  { %p1111_p0 = scmp.ne.s32.totalorder %s105_s25, %s1110_s28  ;;  %p1114_p2 = scmp.lt.u32.totalorder %s2001_s8, %s1110_s28 }
  0x3f   :  { %p1116_p4 = scmp.lt.u32.totalorder %s1110_s28, %s105_s25 }
  0x40   :  { %p1115_p3 = por %p1114_p2, %p1113_p1 }
  0x42   :  { %p1117_p5 = por %p1116_p4, %p1115_p3 }
  0x44   :  { %p1118_p6 = pnand %p1117_p5, %p1111_p0 }
  0x46   :  { %1121 = shalt.err (!%p1118_p6)  }
  0x47   :  { %s1122_s24 = scalar_lea.vmem %s1992_s0, 16  ;;  %p1127_p8 = scmp.lt.s32.totalorder %s1992_s0, %s1984_s21 }
  0x48   :  { %p1123_p7 = scmp.ne.s32.totalorder %s1992_s0, %s1122_s24  ;;  %p1128_p9 = scmp.lt.s32.totalorder %s2010_s12, %s1122_s24 }
  0x4a   :  { %p1129_p10 = por %p1128_p9, %p1127_p8 }
  0x4c   :  { %p1130_p12 = pnand %p1129_p10, %p1123_p7 }
  0x4e   :  { %1133 = shalt.err (!%p1130_p12)  }
  0x4f   :  { %118 = dma.hbm_to_vmem [thread:$0]  %s105_s25, 16, %s1992_s0, [#allocation2 + $0x2] }
  0x50   :  { %s120_s4 = scalar_lea.hbm %s2518_s1, %s956_s26  ;;  %s1924_s5 = smov [#allocation5 + $0x3]  }
  0x51   :  { %s130_s6 = sshll.u32 %s1924_s5, 4  ;;  %s2050_s7 = sld [smem:[#allocation4 + $0x4]]  ;;  %s131_s6 = int_to_ptr.vmem [resolvable:$true] %s130_s6 }
  0x52   :  { %s1134_s9 = scalar_lea.hbm %s120_s4, 16  ;;  %p1137_p0 = scmp.lt.u32.totalorder %s120_s4, %s2518_s1 }
  0x53   :  { %p1135_p13 = scmp.ne.s32.totalorder %s120_s4, %s1134_s9  ;;  %p1138_p1 = scmp.lt.u32.totalorder %s2001_s8, %s1134_s9 }
  0x54   :  { %p1140_p3 = scmp.lt.u32.totalorder %s1134_s9, %s120_s4 }
  0x55   :  { %p1139_p2 = por %p1138_p1, %p1137_p0 }
  0x57   :  { %p1141_p4 = por %p1140_p3, %p1139_p2 }
  0x59   :  { %p1142_p5 = pnand %p1141_p4, %p1135_p13 }
  0x5b   :  { %1145 = shalt.err (!%p1142_p5)  }
  0x5c   :  { %s1146_s0 = scalar_lea.vmem %s131_s6, 16  ;;  %p1151_p7 = scmp.lt.s32.totalorder %s131_s6, %s1984_s21 }
  0x5d   :  { %p1147_p6 = scmp.ne.s32.totalorder %s131_s6, %s1146_s0  ;;  %p1152_p8 = scmp.lt.s32.totalorder %s2010_s12, %s1146_s0 }
  0x5f   :  { %p1153_p9 = por %p1152_p8, %p1151_p7 }
  0x61   :  { %p1154_p10 = pnand %p1153_p9, %p1147_p6 }
  0x63   :  { %1157 = shalt.err (!%p1154_p10)  }
  0x64   :  { %133 = dma.hbm_to_vmem [thread:$0]  %s120_s4, 16, %s131_s6, [#allocation2 + $0x3] }
  0x65   :  { %s1925_s13 = smov [#allocation5 + $0x4]   ;;  %s2058_s15 = sld [smem:[#allocation4 + $0x5]] }
  0x66   :  { %s145_s14 = sshll.u32 %s1925_s13, 4  ;;  %s1926_s16 = smov [#allocation5 + $0x5]   ;;  %s146_s14 = int_to_ptr.vmem [resolvable:$true] %s145_s14 }
  0x67   :  { %s160_s17 = sshll.u32 %s1926_s16, 4  ;;  %s2060_s18 = sld [smem:[#allocation4 + $0x6]]  ;;  %s2063_s17 = int_to_ptr.vmem [resolvable:$true] %s160_s17 }
  0x68   :  { %s957_s19 = sshll.u32 %s2050_s7, 4 }
  0x69   :  { %s135_s23 = scalar_lea.hbm %s2518_s1, %s957_s19 }
  0x6a   :  { %s1158_s25 = scalar_lea.hbm %s135_s23, 16  ;;  %p1161_p13 = scmp.lt.u32.totalorder %s135_s23, %s2518_s1 }
  0x6b   :  { %p1159_p12 = scmp.ne.s32.totalorder %s135_s23, %s1158_s25  ;;  %p1162_p0 = scmp.lt.u32.totalorder %s2001_s8, %s1158_s25 }
  0x6c   :  { %p1164_p2 = scmp.lt.u32.totalorder %s1158_s25, %s135_s23 }
  0x6d   :  { %p1163_p1 = por %p1162_p0, %p1161_p13 }
  0x6f   :  { %p1165_p3 = por %p1164_p2, %p1163_p1 }
  0x71   :  { %p1166_p4 = pnand %p1165_p3, %p1159_p12 }
  0x73   :  { %1169 = shalt.err (!%p1166_p4)  }
  0x74   :  { %s1170_s29 = scalar_lea.vmem %s146_s14, 16  ;;  %p1175_p6 = scmp.lt.s32.totalorder %s146_s14, %s1984_s21 }
  0x75   :  { %p1171_p5 = scmp.ne.s32.totalorder %s146_s14, %s1170_s29  ;;  %p1176_p7 = scmp.lt.s32.totalorder %s2010_s12, %s1170_s29 }
  0x77   :  { %p1177_p8 = por %p1176_p7, %p1175_p6 }
  0x79   :  { %p1178_p9 = pnand %p1177_p8, %p1171_p5 }
  0x7b   :  { %1181 = shalt.err (!%p1178_p9)  }
  0x7c   :  { %148 = dma.hbm_to_vmem [thread:$0]  %s135_s23, 16, %s146_s14, [#allocation2 + $0x4] }
  0x7d   :  { %s958_s30 = sshll.u32 %s2058_s15, 4  ;;  %s1927_s24 = smov [#allocation5 + $0x6]  }
  0x7e   :  { %s175_s27 = sshll.u32 %s1927_s24, 4  ;;  %s150_s5 = scalar_lea.hbm %s2518_s1, %s958_s30  ;;  %s2078_s27 = int_to_ptr.vmem [resolvable:$true] %s175_s27 }
  0x7f   :  { %s1182_s6 = scalar_lea.hbm %s150_s5, 16  ;;  %p1185_p12 = scmp.lt.u32.totalorder %s150_s5, %s2518_s1 }
  0x80   :  { %p1183_p10 = scmp.ne.s32.totalorder %s150_s5, %s1182_s6  ;;  %p1186_p13 = scmp.lt.u32.totalorder %s2001_s8, %s1182_s6 }
  0x81   :  { %p1188_p1 = scmp.lt.u32.totalorder %s1182_s6, %s150_s5 }
  0x82   :  { %p1187_p0 = por %p1186_p13, %p1185_p12 }
  0x84   :  { %p1189_p2 = por %p1188_p1, %p1187_p0 }
  0x86   :  { %p1190_p3 = pnand %p1189_p2, %p1183_p10 }
  0x88   :  { %1193 = shalt.err (!%p1190_p3)  }
  0x89   :  { %s1194_s10 = scalar_lea.vmem %s2063_s17, 16  ;;  %p1199_p5 = scmp.lt.s32.totalorder %s2063_s17, %s1984_s21 }
  0x8a   :  { %p1195_p4 = scmp.ne.s32.totalorder %s2063_s17, %s1194_s10  ;;  %p1200_p6 = scmp.lt.s32.totalorder %s2010_s12, %s1194_s10 }
  0x8c   :  { %p1201_p7 = por %p1200_p6, %p1199_p5 }
  0x8e   :  { %p1202_p8 = pnand %p1201_p7, %p1195_p4 }
  0x90   :  { %1205 = shalt.err (!%p1202_p8)  }
  0x91   :  { %163 = dma.hbm_to_vmem [thread:$0]  %s150_s5, 16, %s2063_s17, [#allocation2 + $0x5] }
  0x92   :  { %s959_s11 = sshll.u32 %s2060_s18, 4  ;;  %s2091_s0 = sld [smem:[#allocation4 + $0x7]] }
  0x93   :  { %s165_s15 = scalar_lea.hbm %s2518_s1, %s959_s11 }
  0x94   :  { %s1206_s16 = scalar_lea.hbm %s165_s15, 16  ;;  %p1209_p10 = scmp.lt.u32.totalorder %s165_s15, %s2518_s1 }
  0x95   :  { %p1207_p9 = scmp.ne.s32.totalorder %s165_s15, %s1206_s16  ;;  %p1210_p12 = scmp.lt.u32.totalorder %s2001_s8, %s1206_s16 }
  0x96   :  { %p1212_p0 = scmp.lt.u32.totalorder %s1206_s16, %s165_s15 }
  0x97   :  { %p1211_p13 = por %p1210_p12, %p1209_p10 }
  0x99   :  { %p1213_p1 = por %p1212_p0, %p1211_p13 }
  0x9b   :  { %p1214_p2 = pnand %p1213_p1, %p1207_p9 }
  0x9d   :  { %1217 = shalt.err (!%p1214_p2)  }
  0x9e   :  { %s1218_s17 = scalar_lea.vmem %s2078_s27, 16  ;;  %p1223_p4 = scmp.lt.s32.totalorder %s2078_s27, %s1984_s21 }
  0x9f   :  { %p1219_p3 = scmp.ne.s32.totalorder %s2078_s27, %s1218_s17  ;;  %p1224_p5 = scmp.lt.s32.totalorder %s2010_s12, %s1218_s17 }
  0xa1   :  { %p1225_p6 = por %p1224_p5, %p1223_p4 }
  0xa3   :  { %p1226_p7 = pnand %p1225_p6, %p1219_p3 }
  0xa5   :  { %1229 = shalt.err (!%p1226_p7)  }
  0xa6   :  { %178 = dma.hbm_to_vmem [thread:$0]  %s165_s15, 16, %s2078_s27, [#allocation2 + $0x6] }
  0xa7   :  { %s1928_s18 = smov [#allocation5 + $0x7]   ;;  %s2106_s23 = sld [smem:[#allocation4 + $0x8]] }
  0xa8   :  { %s190_s22 = sshll.u32 %s1928_s18, 4  ;;  %s1929_s25 = smov [#allocation5 + $0x8]   ;;  %s191_s22 = int_to_ptr.vmem [resolvable:$true] %s190_s22 }
  0xa9   :  { %s205_s26 = sshll.u32 %s1929_s25, 4  ;;  %s2108_s28 = sld [smem:[#allocation4 + $0x9]]  ;;  %s2111_s26 = int_to_ptr.vmem [resolvable:$true] %s205_s26 }
  0xaa   :  { %s960_s29 = sshll.u32 %s2091_s0, 4 }
  0xab   :  { %s180_s3 = scalar_lea.hbm %s2518_s1, %s960_s29 }
  0xac   :  { %s1230_s4 = scalar_lea.hbm %s180_s3, 16  ;;  %p1233_p9 = scmp.lt.u32.totalorder %s180_s3, %s2518_s1 }
  0xad   :  { %p1231_p8 = scmp.ne.s32.totalorder %s180_s3, %s1230_s4  ;;  %p1234_p10 = scmp.lt.u32.totalorder %s2001_s8, %s1230_s4 }
  0xae   :  { %p1236_p13 = scmp.lt.u32.totalorder %s1230_s4, %s180_s3 }
  0xaf   :  { %p1235_p12 = por %p1234_p10, %p1233_p9 }
  0xb1   :  { %p1237_p0 = por %p1236_p13, %p1235_p12 }
  0xb3   :  { %p1238_p1 = pnand %p1237_p0, %p1231_p8 }
  0xb5   :  { %1241 = shalt.err (!%p1238_p1)  }
  0xb6   :  { %s1242_s6 = scalar_lea.vmem %s191_s22, 16  ;;  %p1247_p3 = scmp.lt.s32.totalorder %s191_s22, %s1984_s21 }
  0xb7   :  { %p1243_p2 = scmp.ne.s32.totalorder %s191_s22, %s1242_s6  ;;  %p1248_p4 = scmp.lt.s32.totalorder %s2010_s12, %s1242_s6 }
  0xb9   :  { %p1249_p5 = por %p1248_p4, %p1247_p3 }
  0xbb   :  { %p1250_p6 = pnand %p1249_p5, %p1243_p2 }
  0xbd   :  { %1253 = shalt.err (!%p1250_p6)  }
  0xbe   :  { %193 = dma.hbm_to_vmem [thread:$0]  %s180_s3, 16, %s191_s22, [#allocation2 + $0x7] }
  0xbf   :  { %s961_s7 = sshll.u32 %s2106_s23, 4  ;;  %s1930_s9 = smov [#allocation5 + $0x9]  }
  0xc0   :  { %s220_s10 = sshll.u32 %s1930_s9, 4  ;;  %s195_s13 = scalar_lea.hbm %s2518_s1, %s961_s7  ;;  %s2126_s10 = int_to_ptr.vmem [resolvable:$true] %s220_s10 }
  0xc1   :  { %s1254_s14 = scalar_lea.hbm %s195_s13, 16  ;;  %p1257_p8 = scmp.lt.u32.totalorder %s195_s13, %s2518_s1 }
  0xc2   :  { %p1255_p7 = scmp.ne.s32.totalorder %s195_s13, %s1254_s14  ;;  %p1258_p9 = scmp.lt.u32.totalorder %s2001_s8, %s1254_s14 }
  0xc3   :  { %p1260_p12 = scmp.lt.u32.totalorder %s1254_s14, %s195_s13 }
  0xc4   :  { %p1259_p10 = por %p1258_p9, %p1257_p8 }
  0xc6   :  { %p1261_p13 = por %p1260_p12, %p1259_p10 }
  0xc8   :  { %p1262_p0 = pnand %p1261_p13, %p1255_p7 }
  0xca   :  { %1265 = shalt.err (!%p1262_p0)  }
  0xcb   :  { %s1266_s19 = scalar_lea.vmem %s2111_s26, 16  ;;  %p1271_p2 = scmp.lt.s32.totalorder %s2111_s26, %s1984_s21 }
  0xcc   :  { %p1267_p1 = scmp.ne.s32.totalorder %s2111_s26, %s1266_s19  ;;  %p1272_p3 = scmp.lt.s32.totalorder %s2010_s12, %s1266_s19 }
  0xce   :  { %p1273_p4 = por %p1272_p3, %p1271_p2 }
  0xd0   :  { %p1274_p5 = pnand %p1273_p4, %p1267_p1 }
  0xd2   :  { %1277 = shalt.err (!%p1274_p5)  }
  0xd3   :  { %208 = dma.hbm_to_vmem [thread:$0]  %s195_s13, 16, %s2111_s26, [#allocation2 + $0x8] }
  0xd4   :  { %s962_s20 = sshll.u32 %s2108_s28, 4  ;;  %s2139_s17 = sld [smem:[#allocation4 + $0xa]] }
  0xd5   :  { %s210_s23 = scalar_lea.hbm %s2518_s1, %s962_s20 }
  0xd6   :  { %s1278_s25 = scalar_lea.hbm %s210_s23, 16  ;;  %p1281_p7 = scmp.lt.u32.totalorder %s210_s23, %s2518_s1 }
  0xd7   :  { %p1279_p6 = scmp.ne.s32.totalorder %s210_s23, %s1278_s25  ;;  %p1282_p8 = scmp.lt.u32.totalorder %s2001_s8, %s1278_s25 }
  0xd8   :  { %p1284_p10 = scmp.lt.u32.totalorder %s1278_s25, %s210_s23 }
  0xd9   :  { %p1283_p9 = por %p1282_p8, %p1281_p7 }
  0xdb   :  { %p1285_p12 = por %p1284_p10, %p1283_p9 }
  0xdd   :  { %p1286_p13 = pnand %p1285_p12, %p1279_p6 }
  0xdf   :  { %1289 = shalt.err (!%p1286_p13)  }
  0xe0   :  { %s1290_s26 = scalar_lea.vmem %s2126_s10, 16  ;;  %p1295_p1 = scmp.lt.s32.totalorder %s2126_s10, %s1984_s21 }
  0xe1   :  { %p1291_p0 = scmp.ne.s32.totalorder %s2126_s10, %s1290_s26  ;;  %p1296_p2 = scmp.lt.s32.totalorder %s2010_s12, %s1290_s26 }
  0xe3   :  { %p1297_p3 = por %p1296_p2, %p1295_p1 }
  0xe5   :  { %p1298_p4 = pnand %p1297_p3, %p1291_p0 }
  0xe7   :  { %1301 = shalt.err (!%p1298_p4)  }
  0xe8   :  { %223 = dma.hbm_to_vmem [thread:$0]  %s210_s23, 16, %s2126_s10, [#allocation2 + $0x9] }
  0xe9   :  { %s1931_s28 = smov [#allocation5 + $0xa]   ;;  %s2154_s3 = sld [smem:[#allocation4 + $0xb]] }
  0xea   :  { %s235_s24 = sshll.u32 %s1931_s28, 4  ;;  %s1932_s4 = smov [#allocation5 + $0xb]   ;;  %s236_s24 = int_to_ptr.vmem [resolvable:$true] %s235_s24 }
  0xeb   :  { %s250_s5 = sshll.u32 %s1932_s4, 4  ;;  %s2156_s27 = sld [smem:[#allocation4 + $0xc]]  ;;  %s2159_s5 = int_to_ptr.vmem [resolvable:$true] %s250_s5 }
  0xec   :  { %s963_s6 = sshll.u32 %s2139_s17, 4 }
  0xed   :  { %s225_s11 = scalar_lea.hbm %s2518_s1, %s963_s6 }
  0xee   :  { %s1302_s0 = scalar_lea.hbm %s225_s11, 16  ;;  %p1305_p6 = scmp.lt.u32.totalorder %s225_s11, %s2518_s1 }
  0xef   :  { %p1303_p5 = scmp.ne.s32.totalorder %s225_s11, %s1302_s0  ;;  %p1306_p7 = scmp.lt.u32.totalorder %s2001_s8, %s1302_s0 }
  0xf0   :  { %p1308_p9 = scmp.lt.u32.totalorder %s1302_s0, %s225_s11 }
  0xf1   :  { %p1307_p8 = por %p1306_p7, %p1305_p6 }
  0xf3   :  { %p1309_p10 = por %p1308_p9, %p1307_p8 }
  0xf5   :  { %p1310_p12 = pnand %p1309_p10, %p1303_p5 }
  0xf7   :  { %1313 = shalt.err (!%p1310_p12)  }
  0xf8   :  { %s1314_s14 = scalar_lea.vmem %s236_s24, 16  ;;  %p1319_p0 = scmp.lt.s32.totalorder %s236_s24, %s1984_s21 }
  0xf9   :  { %p1315_p13 = scmp.ne.s32.totalorder %s236_s24, %s1314_s14  ;;  %p1320_p1 = scmp.lt.s32.totalorder %s2010_s12, %s1314_s14 }
  0xfb   :  { %p1321_p2 = por %p1320_p1, %p1319_p0 }
  0xfd   :  { %p1322_p3 = pnand %p1321_p2, %p1315_p13 }
  0xff   :  { %1325 = shalt.err (!%p1322_p3)  }
 0x100   :  { %238 = dma.hbm_to_vmem [thread:$0]  %s225_s11, 16, %s236_s24, [#allocation2 + $0xa] }
 0x101   :  { %s964_s15 = sshll.u32 %s2154_s3, 4  ;;  %s1933_s16 = smov [#allocation5 + $0xc]  }
 0x102   :  { %s265_s19 = sshll.u32 %s1933_s16, 4  ;;  %s240_s18 = scalar_lea.hbm %s2518_s1, %s964_s15  ;;  %s2174_s19 = int_to_ptr.vmem [resolvable:$true] %s265_s19 }
 0x103   :  { %s1326_s22 = scalar_lea.hbm %s240_s18, 16  ;;  %p1329_p5 = scmp.lt.u32.totalorder %s240_s18, %s2518_s1 }
 0x104   :  { %p1327_p4 = scmp.ne.s32.totalorder %s240_s18, %s1326_s22  ;;  %p1330_p6 = scmp.lt.u32.totalorder %s2001_s8, %s1326_s22 }
 0x105   :  { %p1332_p8 = scmp.lt.u32.totalorder %s1326_s22, %s240_s18 }
 0x106   :  { %p1331_p7 = por %p1330_p6, %p1329_p5 }
 0x108   :  { %p1333_p9 = por %p1332_p8, %p1331_p7 }
 0x10a   :  { %p1334_p10 = pnand %p1333_p9, %p1327_p4 }
 0x10c   :  { %1337 = shalt.err (!%p1334_p10)  }
 0x10d   :  { %s1338_s29 = scalar_lea.vmem %s2159_s5, 16  ;;  %p1343_p13 = scmp.lt.s32.totalorder %s2159_s5, %s1984_s21 }
 0x10e   :  { %p1339_p12 = scmp.ne.s32.totalorder %s2159_s5, %s1338_s29  ;;  %p1344_p0 = scmp.lt.s32.totalorder %s2010_s12, %s1338_s29 }
 0x110   :  { %p1345_p1 = por %p1344_p0, %p1343_p13 }
 0x112   :  { %p1346_p2 = pnand %p1345_p1, %p1339_p12 }
 0x114   :  { %1349 = shalt.err (!%p1346_p2)  }
 0x115   :  { %253 = dma.hbm_to_vmem [thread:$0]  %s240_s18, 16, %s2159_s5, [#allocation2 + $0xb] }
 0x116   :  { %s965_s30 = sshll.u32 %s2156_s27, 4  ;;  %s2187_s26 = sld [smem:[#allocation4 + $0xd]] }
 0x117   :  { %s255_s3 = scalar_lea.hbm %s2518_s1, %s965_s30 }
 0x118   :  { %s1350_s4 = scalar_lea.hbm %s255_s3, 16  ;;  %p1353_p4 = scmp.lt.u32.totalorder %s255_s3, %s2518_s1 }
 0x119   :  { %p1351_p3 = scmp.ne.s32.totalorder %s255_s3, %s1350_s4  ;;  %p1354_p5 = scmp.lt.u32.totalorder %s2001_s8, %s1350_s4 }
 0x11a   :  { %p1356_p7 = scmp.lt.u32.totalorder %s1350_s4, %s255_s3 }
 0x11b   :  { %p1355_p6 = por %p1354_p5, %p1353_p4 }
 0x11d   :  { %p1357_p8 = por %p1356_p7, %p1355_p6 }
 0x11f   :  { %p1358_p9 = pnand %p1357_p8, %p1351_p3 }
 0x121   :  { %1361 = shalt.err (!%p1358_p9)  }
 0x122   :  { %s1362_s5 = scalar_lea.vmem %s2174_s19, 16  ;;  %p1367_p12 = scmp.lt.s32.totalorder %s2174_s19, %s1984_s21 }
 0x123   :  { %p1363_p10 = scmp.ne.s32.totalorder %s2174_s19, %s1362_s5  ;;  %p1368_p13 = scmp.lt.s32.totalorder %s2010_s12, %s1362_s5 }
 0x125   :  { %p1369_p0 = por %p1368_p13, %p1367_p12 }
 0x127   :  { %p1370_p1 = pnand %p1369_p0, %p1363_p10 }
 0x129   :  { %1373 = shalt.err (!%p1370_p1)  }
 0x12a   :  { %268 = dma.hbm_to_vmem [thread:$0]  %s255_s3, 16, %s2174_s19, [#allocation2 + $0xc] }
 0x12b   :  { %s1934_s27 = smov [#allocation5 + $0xd]   ;;  %s2202_s11 = sld [smem:[#allocation4 + $0xe]] }
 0x12c   :  { %s280_s9 = sshll.u32 %s1934_s27, 4  ;;  %s1935_s0 = smov [#allocation5 + $0xe]   ;;  %s281_s9 = int_to_ptr.vmem [resolvable:$true] %s280_s9 }
 0x12d   :  { %s295_s13 = sshll.u32 %s1935_s0, 4  ;;  %s2204_s10 = sld [smem:[#allocation4 + $0xf]]  ;;  %s2207_s13 = int_to_ptr.vmem [resolvable:$true] %s295_s13 }
 0x12e   :  { %s966_s14 = sshll.u32 %s2187_s26, 4 }
 0x12f   :  { %s270_s20 = scalar_lea.hbm %s2518_s1, %s966_s14 }
 0x130   :  { %s1374_s17 = scalar_lea.hbm %s270_s20, 16  ;;  %p1377_p3 = scmp.lt.u32.totalorder %s270_s20, %s2518_s1 }
 0x131   :  { %p1375_p2 = scmp.ne.s32.totalorder %s270_s20, %s1374_s17  ;;  %p1378_p4 = scmp.lt.u32.totalorder %s2001_s8, %s1374_s17 }
 0x132   :  { %p1380_p6 = scmp.lt.u32.totalorder %s1374_s17, %s270_s20 }
 0x133   :  { %p1379_p5 = por %p1378_p4, %p1377_p3 }
 0x135   :  { %p1381_p7 = por %p1380_p6, %p1379_p5 }
 0x137   :  { %p1382_p8 = pnand %p1381_p7, %p1375_p2 }
 0x139   :  { %1385 = shalt.err (!%p1382_p8)  }
 0x13a   :  { %s1386_s22 = scalar_lea.vmem %s281_s9, 16  ;;  %p1391_p10 = scmp.lt.s32.totalorder %s281_s9, %s1984_s21 }
 0x13b   :  { %p1387_p9 = scmp.ne.s32.totalorder %s281_s9, %s1386_s22  ;;  %p1392_p12 = scmp.lt.s32.totalorder %s2010_s12, %s1386_s22 }
 0x13d   :  { %p1393_p13 = por %p1392_p12, %p1391_p10 }
 0x13f   :  { %p1394_p0 = pnand %p1393_p13, %p1387_p9 }
 0x141   :  { %1397 = shalt.err (!%p1394_p0)  }
 0x142   :  { %283 = dma.hbm_to_vmem [thread:$0]  %s270_s20, 16, %s281_s9, [#allocation2 + $0xd] }
 0x143   :  { %s967_s23 = sshll.u32 %s2202_s11, 4  ;;  %s1936_s25 = smov [#allocation5 + $0xf]  }
 0x144   :  { %s310_s29 = sshll.u32 %s1936_s25, 4  ;;  %s285_s28 = scalar_lea.hbm %s2518_s1, %s967_s23  ;;  %s2222_s29 = int_to_ptr.vmem [resolvable:$true] %s310_s29 }
 0x145   :  { %s1398_s24 = scalar_lea.hbm %s285_s28, 16  ;;  %p1401_p2 = scmp.lt.u32.totalorder %s285_s28, %s2518_s1 }
 0x146   :  { %p1399_p1 = scmp.ne.s32.totalorder %s285_s28, %s1398_s24  ;;  %p1402_p3 = scmp.lt.u32.totalorder %s2001_s8, %s1398_s24 }
 0x147   :  { %p1404_p5 = scmp.lt.u32.totalorder %s1398_s24, %s285_s28 }
 0x148   :  { %p1403_p4 = por %p1402_p3, %p1401_p2 }
 0x14a   :  { %p1405_p6 = por %p1404_p5, %p1403_p4 }
 0x14c   :  { %p1406_p7 = pnand %p1405_p6, %p1399_p1 }
 0x14e   :  { %1409 = shalt.err (!%p1406_p7)  }
 0x14f   :  { %s1410_s6 = scalar_lea.vmem %s2207_s13, 16  ;;  %p1415_p9 = scmp.lt.s32.totalorder %s2207_s13, %s1984_s21 }
 0x150   :  { %p1411_p8 = scmp.ne.s32.totalorder %s2207_s13, %s1410_s6  ;;  %p1416_p10 = scmp.lt.s32.totalorder %s2010_s12, %s1410_s6 }
 0x152   :  { %p1417_p12 = por %p1416_p10, %p1415_p9 }
 0x154   :  { %p1418_p13 = pnand %p1417_p12, %p1411_p8 }
 0x156   :  { %1421 = shalt.err (!%p1418_p13)  }
 0x157   :  { %298 = dma.hbm_to_vmem [thread:$0]  %s285_s28, 16, %s2207_s13, [#allocation2 + $0xe] }
 0x158   :  { %s968_s7 = sshll.u32 %s2204_s10, 4  ;;  %s2235_s5 = sld [smem:[#allocation4 + $0x10]] }
 0x159   :  { %s300_s11 = scalar_lea.hbm %s2518_s1, %s968_s7 }
 0x15a   :  { %s1422_s0 = scalar_lea.hbm %s300_s11, 16  ;;  %p1425_p1 = scmp.lt.u32.totalorder %s300_s11, %s2518_s1 }
 0x15b   :  { %p1423_p0 = scmp.ne.s32.totalorder %s300_s11, %s1422_s0  ;;  %p1426_p2 = scmp.lt.u32.totalorder %s2001_s8, %s1422_s0 }
 0x15c   :  { %p1428_p4 = scmp.lt.u32.totalorder %s1422_s0, %s300_s11 }
 0x15d   :  { %p1427_p3 = por %p1426_p2, %p1425_p1 }
 0x15f   :  { %p1429_p5 = por %p1428_p4, %p1427_p3 }
 0x161   :  { %p1430_p6 = pnand %p1429_p5, %p1423_p0 }
 0x163   :  { %1433 = shalt.err (!%p1430_p6)  }
 0x164   :  { %s1434_s13 = scalar_lea.vmem %s2222_s29, 16  ;;  %p1439_p8 = scmp.lt.s32.totalorder %s2222_s29, %s1984_s21 }
 0x165   :  { %p1435_p7 = scmp.ne.s32.totalorder %s2222_s29, %s1434_s13  ;;  %p1440_p9 = scmp.lt.s32.totalorder %s2010_s12, %s1434_s13 }
 0x167   :  { %p1441_p10 = por %p1440_p9, %p1439_p8 }
 0x169   :  { %p1442_p12 = pnand %p1441_p10, %p1435_p7 }
 0x16b   :  { %1445 = shalt.err (!%p1442_p12)  }
 0x16c   :  { %313 = dma.hbm_to_vmem [thread:$0]  %s300_s11, 16, %s2222_s29, [#allocation2 + $0xf] }
 0x16d   :  { %s1937_s10 = smov [#allocation5 + $0x10]   ;;  %s2250_s20 = sld [smem:[#allocation4 + $0x11]] }
 0x16e   :  { %s325_s16 = sshll.u32 %s1937_s10, 4  ;;  %s1938_s17 = smov [#allocation5 + $0x11]   ;;  %s326_s16 = int_to_ptr.vmem [resolvable:$true] %s325_s16 }
 0x16f   :  { %s340_s18 = sshll.u32 %s1938_s17, 4  ;;  %s2252_s19 = sld [smem:[#allocation4 + $0x12]]  ;;  %s2255_s18 = int_to_ptr.vmem [resolvable:$true] %s340_s18 }
 0x170   :  { %s969_s22 = sshll.u32 %s2235_s5, 4 }
 0x171   :  { %s315_s30 = scalar_lea.hbm %s2518_s1, %s969_s22 }
 0x172   :  { %s1446_s26 = scalar_lea.hbm %s315_s30, 16  ;;  %p1449_p0 = scmp.lt.u32.totalorder %s315_s30, %s2518_s1 }
 0x173   :  { %p1447_p13 = scmp.ne.s32.totalorder %s315_s30, %s1446_s26  ;;  %p1450_p1 = scmp.lt.u32.totalorder %s2001_s8, %s1446_s26 }
 0x174   :  { %p1452_p3 = scmp.lt.u32.totalorder %s1446_s26, %s315_s30 }
 0x175   :  { %p1451_p2 = por %p1450_p1, %p1449_p0 }
 0x177   :  { %p1453_p4 = por %p1452_p3, %p1451_p2 }
 0x179   :  { %p1454_p5 = pnand %p1453_p4, %p1447_p13 }
 0x17b   :  { %1457 = shalt.err (!%p1454_p5)  }
 0x17c   :  { %s1458_s24 = scalar_lea.vmem %s326_s16, 16  ;;  %p1463_p7 = scmp.lt.s32.totalorder %s326_s16, %s1984_s21 }
 0x17d   :  { %p1459_p6 = scmp.ne.s32.totalorder %s326_s16, %s1458_s24  ;;  %p1464_p8 = scmp.lt.s32.totalorder %s2010_s12, %s1458_s24 }
 0x17f   :  { %p1465_p9 = por %p1464_p8, %p1463_p7 }
 0x181   :  { %p1466_p10 = pnand %p1465_p9, %p1459_p6 }
 0x183   :  { %1469 = shalt.err (!%p1466_p10)  }
 0x184   :  { %328 = dma.hbm_to_vmem [thread:$0]  %s315_s30, 16, %s326_s16, [#allocation2 + $0x10] }
 0x185   :  { %s970_s3 = sshll.u32 %s2250_s20, 4  ;;  %s1939_s4 = smov [#allocation5 + $0x12]  }
 0x186   :  { %s355_s6 = sshll.u32 %s1939_s4, 4  ;;  %s330_s27 = scalar_lea.hbm %s2518_s1, %s970_s3  ;;  %s2270_s6 = int_to_ptr.vmem [resolvable:$true] %s355_s6 }
 0x187   :  { %s1470_s9 = scalar_lea.hbm %s330_s27, 16  ;;  %p1473_p13 = scmp.lt.u32.totalorder %s330_s27, %s2518_s1 }
 0x188   :  { %p1471_p12 = scmp.ne.s32.totalorder %s330_s27, %s1470_s9  ;;  %p1474_p0 = scmp.lt.u32.totalorder %s2001_s8, %s1470_s9 }
 0x189   :  { %p1476_p2 = scmp.lt.u32.totalorder %s1470_s9, %s330_s27 }
 0x18a   :  { %p1475_p1 = por %p1474_p0, %p1473_p13 }
 0x18c   :  { %p1477_p3 = por %p1476_p2, %p1475_p1 }
 0x18e   :  { %p1478_p4 = pnand %p1477_p3, %p1471_p12 }
 0x190   :  { %1481 = shalt.err (!%p1478_p4)  }
 0x191   :  { %s1482_s14 = scalar_lea.vmem %s2255_s18, 16  ;;  %p1487_p6 = scmp.lt.s32.totalorder %s2255_s18, %s1984_s21 }
 0x192   :  { %p1483_p5 = scmp.ne.s32.totalorder %s2255_s18, %s1482_s14  ;;  %p1488_p7 = scmp.lt.s32.totalorder %s2010_s12, %s1482_s14 }
 0x194   :  { %p1489_p8 = por %p1488_p7, %p1487_p6 }
 0x196   :  { %p1490_p9 = pnand %p1489_p8, %p1483_p5 }
 0x198   :  { %1493 = shalt.err (!%p1490_p9)  }
 0x199   :  { %343 = dma.hbm_to_vmem [thread:$0]  %s330_s27, 16, %s2255_s18, [#allocation2 + $0x11] }
 0x19a   :  { %s971_s15 = sshll.u32 %s2252_s19, 4  ;;  %s2283_s13 = sld [smem:[#allocation4 + $0x13]] }
 0x19b   :  { %s345_s20 = scalar_lea.hbm %s2518_s1, %s971_s15 }
 0x19c   :  { %s1494_s17 = scalar_lea.hbm %s345_s20, 16  ;;  %p1497_p12 = scmp.lt.u32.totalorder %s345_s20, %s2518_s1 }
 0x19d   :  { %p1495_p10 = scmp.ne.s32.totalorder %s345_s20, %s1494_s17  ;;  %p1498_p13 = scmp.lt.u32.totalorder %s2001_s8, %s1494_s17 }
 0x19e   :  { %p1500_p1 = scmp.lt.u32.totalorder %s1494_s17, %s345_s20 }
 0x19f   :  { %p1499_p0 = por %p1498_p13, %p1497_p12 }
 0x1a1   :  { %p1501_p2 = por %p1500_p1, %p1499_p0 }
 0x1a3   :  { %p1502_p3 = pnand %p1501_p2, %p1495_p10 }
 0x1a5   :  { %1505 = shalt.err (!%p1502_p3)  }
 0x1a6   :  { %s1506_s18 = scalar_lea.vmem %s2270_s6, 16  ;;  %p1511_p5 = scmp.lt.s32.totalorder %s2270_s6, %s1984_s21 }
 0x1a7   :  { %p1507_p4 = scmp.ne.s32.totalorder %s2270_s6, %s1506_s18  ;;  %p1512_p6 = scmp.lt.s32.totalorder %s2010_s12, %s1506_s18 }
 0x1a9   :  { %p1513_p7 = por %p1512_p6, %p1511_p5 }
 0x1ab   :  { %p1514_p8 = pnand %p1513_p7, %p1507_p4 }
 0x1ad   :  { %1517 = shalt.err (!%p1514_p8)  }
 0x1ae   :  { %358 = dma.hbm_to_vmem [thread:$0]  %s345_s20, 16, %s2270_s6, [#allocation2 + $0x12] }
 0x1af   :  { %s1940_s19 = smov [#allocation5 + $0x13]   ;;  %s2298_s30 = sld [smem:[#allocation4 + $0x14]] }
 0x1b0   :  { %s370_s25 = sshll.u32 %s1940_s19, 4  ;;  %s1941_s26 = smov [#allocation5 + $0x14]   ;;  %s371_s25 = int_to_ptr.vmem [resolvable:$true] %s370_s25 }
 0x1b1   :  { %s385_s28 = sshll.u32 %s1941_s26, 4  ;;  %s2300_s29 = sld [smem:[#allocation4 + $0x15]]  ;;  %s2303_s28 = int_to_ptr.vmem [resolvable:$true] %s385_s28 }
 0x1b2   :  { %s972_s24 = sshll.u32 %s2283_s13, 4 }
 0x1b3   :  { %s360_s7 = scalar_lea.hbm %s2518_s1, %s972_s24 }
 0x1b4   :  { %s1518_s5 = scalar_lea.hbm %s360_s7, 16  ;;  %p1521_p10 = scmp.lt.u32.totalorder %s360_s7, %s2518_s1 }
 0x1b5   :  { %p1519_p9 = scmp.ne.s32.totalorder %s360_s7, %s1518_s5  ;;  %p1522_p12 = scmp.lt.u32.totalorder %s2001_s8, %s1518_s5 }
 0x1b6   :  { %p1524_p0 = scmp.lt.u32.totalorder %s1518_s5, %s360_s7 }
 0x1b7   :  { %p1523_p13 = por %p1522_p12, %p1521_p10 }
 0x1b9   :  { %p1525_p1 = por %p1524_p0, %p1523_p13 }
 0x1bb   :  { %p1526_p2 = pnand %p1525_p1, %p1519_p9 }
 0x1bd   :  { %1529 = shalt.err (!%p1526_p2)  }
 0x1be   :  { %s1530_s9 = scalar_lea.vmem %s371_s25, 16  ;;  %p1535_p4 = scmp.lt.s32.totalorder %s371_s25, %s1984_s21 }
 0x1bf   :  { %p1531_p3 = scmp.ne.s32.totalorder %s371_s25, %s1530_s9  ;;  %p1536_p5 = scmp.lt.s32.totalorder %s2010_s12, %s1530_s9 }
 0x1c1   :  { %p1537_p6 = por %p1536_p5, %p1535_p4 }
 0x1c3   :  { %p1538_p7 = pnand %p1537_p6, %p1531_p3 }
 0x1c5   :  { %1541 = shalt.err (!%p1538_p7)  }
 0x1c6   :  { %373 = dma.hbm_to_vmem [thread:$0]  %s360_s7, 16, %s371_s25, [#allocation2 + $0x13] }
 0x1c7   :  { %s973_s11 = sshll.u32 %s2298_s30, 4  ;;  %s1942_s0 = smov [#allocation5 + $0x15]  }
 0x1c8   :  { %s400_s14 = sshll.u32 %s1942_s0, 4  ;;  %s375_s10 = scalar_lea.hbm %s2518_s1, %s973_s11  ;;  %s2318_s14 = int_to_ptr.vmem [resolvable:$true] %s400_s14 }
 0x1c9   :  { %s1542_s16 = scalar_lea.hbm %s375_s10, 16  ;;  %p1545_p9 = scmp.lt.u32.totalorder %s375_s10, %s2518_s1 }
 0x1ca   :  { %p1543_p8 = scmp.ne.s32.totalorder %s375_s10, %s1542_s16  ;;  %p1546_p10 = scmp.lt.u32.totalorder %s2001_s8, %s1542_s16 }
 0x1cb   :  { %p1548_p13 = scmp.lt.u32.totalorder %s1542_s16, %s375_s10 }
 0x1cc   :  { %p1547_p12 = por %p1546_p10, %p1545_p9 }
 0x1ce   :  { %p1549_p0 = por %p1548_p13, %p1547_p12 }
 0x1d0   :  { %p1550_p1 = pnand %p1549_p0, %p1543_p8 }
 0x1d2   :  { %1553 = shalt.err (!%p1550_p1)  }
 0x1d3   :  { %s1554_s22 = scalar_lea.vmem %s2303_s28, 16  ;;  %p1559_p3 = scmp.lt.s32.totalorder %s2303_s28, %s1984_s21 }
 0x1d4   :  { %p1555_p2 = scmp.ne.s32.totalorder %s2303_s28, %s1554_s22  ;;  %p1560_p4 = scmp.lt.s32.totalorder %s2010_s12, %s1554_s22 }
 0x1d6   :  { %p1561_p5 = por %p1560_p4, %p1559_p3 }
 0x1d8   :  { %p1562_p6 = pnand %p1561_p5, %p1555_p2 }
 0x1da   :  { %1565 = shalt.err (!%p1562_p6)  }
 0x1db   :  { %388 = dma.hbm_to_vmem [thread:$0]  %s375_s10, 16, %s2303_s28, [#allocation2 + $0x14] }
 0x1dc   :  { %s974_s23 = sshll.u32 %s2300_s29, 4  ;;  %s2331_s18 = sld [smem:[#allocation4 + $0x16]] }
 0x1dd   :  { %s390_s30 = scalar_lea.hbm %s2518_s1, %s974_s23 }
 0x1de   :  { %s1566_s26 = scalar_lea.hbm %s390_s30, 16  ;;  %p1569_p8 = scmp.lt.u32.totalorder %s390_s30, %s2518_s1 }
 0x1df   :  { %p1567_p7 = scmp.ne.s32.totalorder %s390_s30, %s1566_s26  ;;  %p1570_p9 = scmp.lt.u32.totalorder %s2001_s8, %s1566_s26 }
 0x1e0   :  { %p1572_p12 = scmp.lt.u32.totalorder %s1566_s26, %s390_s30 }
 0x1e1   :  { %p1571_p10 = por %p1570_p9, %p1569_p8 }
 0x1e3   :  { %p1573_p13 = por %p1572_p12, %p1571_p10 }
 0x1e5   :  { %p1574_p0 = pnand %p1573_p13, %p1567_p7 }
 0x1e7   :  { %1577 = shalt.err (!%p1574_p0)  }
 0x1e8   :  { %s1578_s28 = scalar_lea.vmem %s2318_s14, 16  ;;  %p1583_p2 = scmp.lt.s32.totalorder %s2318_s14, %s1984_s21 }
 0x1e9   :  { %p1579_p1 = scmp.ne.s32.totalorder %s2318_s14, %s1578_s28  ;;  %p1584_p3 = scmp.lt.s32.totalorder %s2010_s12, %s1578_s28 }
 0x1eb   :  { %p1585_p4 = por %p1584_p3, %p1583_p2 }
 0x1ed   :  { %p1586_p5 = pnand %p1585_p4, %p1579_p1 }
 0x1ef   :  { %1589 = shalt.err (!%p1586_p5)  }
 0x1f0   :  { %403 = dma.hbm_to_vmem [thread:$0]  %s390_s30, 16, %s2318_s14, [#allocation2 + $0x15] }
 0x1f1   :  { %s1943_s29 = smov [#allocation5 + $0x16]   ;;  %s2346_s7 = sld [smem:[#allocation4 + $0x17]] }
 0x1f2   :  { %s415_s4 = sshll.u32 %s1943_s29, 4  ;;  %s1944_s5 = smov [#allocation5 + $0x17]   ;;  %s416_s4 = int_to_ptr.vmem [resolvable:$true] %s415_s4 }
 0x1f3   :  { %s430_s27 = sshll.u32 %s1944_s5, 4  ;;  %s2348_s6 = sld [smem:[#allocation4 + $0x18]]  ;;  %s2351_s27 = int_to_ptr.vmem [resolvable:$true] %s430_s27 }
 0x1f4   :  { %s975_s9 = sshll.u32 %s2331_s18, 4 }
 0x1f5   :  { %s405_s15 = scalar_lea.hbm %s2518_s1, %s975_s9 }
 0x1f6   :  { %s1590_s13 = scalar_lea.hbm %s405_s15, 16  ;;  %p1593_p7 = scmp.lt.u32.totalorder %s405_s15, %s2518_s1 }
 0x1f7   :  { %p1591_p6 = scmp.ne.s32.totalorder %s405_s15, %s1590_s13  ;;  %p1594_p8 = scmp.lt.u32.totalorder %s2001_s8, %s1590_s13 }
 0x1f8   :  { %p1596_p10 = scmp.lt.u32.totalorder %s1590_s13, %s405_s15 }
 0x1f9   :  { %p1595_p9 = por %p1594_p8, %p1593_p7 }
 0x1fb   :  { %p1597_p12 = por %p1596_p10, %p1595_p9 }
 0x1fd   :  { %p1598_p13 = pnand %p1597_p12, %p1591_p6 }
 0x1ff   :  { %1601 = shalt.err (!%p1598_p13)  }
 0x200   :  { %s1602_s16 = scalar_lea.vmem %s416_s4, 16  ;;  %p1607_p1 = scmp.lt.s32.totalorder %s416_s4, %s1984_s21 }
 0x201   :  { %p1603_p0 = scmp.ne.s32.totalorder %s416_s4, %s1602_s16  ;;  %p1608_p2 = scmp.lt.s32.totalorder %s2010_s12, %s1602_s16 }
 0x203   :  { %p1609_p3 = por %p1608_p2, %p1607_p1 }
 0x205   :  { %p1610_p4 = pnand %p1609_p3, %p1603_p0 }
 0x207   :  { %1613 = shalt.err (!%p1610_p4)  }
 0x208   :  { %418 = dma.hbm_to_vmem [thread:$0]  %s405_s15, 16, %s416_s4, [#allocation2 + $0x16] }
 0x209   :  { %s976_s20 = sshll.u32 %s2346_s7, 4  ;;  %s1945_s17 = smov [#allocation5 + $0x18]  }
 0x20a   :  { %s445_s22 = sshll.u32 %s1945_s17, 4  ;;  %s420_s19 = scalar_lea.hbm %s2518_s1, %s976_s20  ;;  %s2366_s22 = int_to_ptr.vmem [resolvable:$true] %s445_s22 }
 0x20b   :  { %s1614_s25 = scalar_lea.hbm %s420_s19, 16  ;;  %p1617_p6 = scmp.lt.u32.totalorder %s420_s19, %s2518_s1 }
 0x20c   :  { %p1615_p5 = scmp.ne.s32.totalorder %s420_s19, %s1614_s25  ;;  %p1618_p7 = scmp.lt.u32.totalorder %s2001_s8, %s1614_s25 }
 0x20d   :  { %p1620_p9 = scmp.lt.u32.totalorder %s1614_s25, %s420_s19 }
 0x20e   :  { %p1619_p8 = por %p1618_p7, %p1617_p6 }
 0x210   :  { %p1621_p10 = por %p1620_p9, %p1619_p8 }
 0x212   :  { %p1622_p12 = pnand %p1621_p10, %p1615_p5 }
 0x214   :  { %1625 = shalt.err (!%p1622_p12)  }
 0x215   :  { %s1626_s24 = scalar_lea.vmem %s2351_s27, 16  ;;  %p1631_p0 = scmp.lt.s32.totalorder %s2351_s27, %s1984_s21 }
 0x216   :  { %p1627_p13 = scmp.ne.s32.totalorder %s2351_s27, %s1626_s24  ;;  %p1632_p1 = scmp.lt.s32.totalorder %s2010_s12, %s1626_s24 }
 0x218   :  { %p1633_p2 = por %p1632_p1, %p1631_p0 }
 0x21a   :  { %p1634_p3 = pnand %p1633_p2, %p1627_p13 }
 0x21c   :  { %1637 = shalt.err (!%p1634_p3)  }
 0x21d   :  { %433 = dma.hbm_to_vmem [thread:$0]  %s420_s19, 16, %s2351_s27, [#allocation2 + $0x17] }
 0x21e   :  { %s977_s3 = sshll.u32 %s2348_s6, 4  ;;  %s2379_s28 = sld [smem:[#allocation4 + $0x19]] }
 0x21f   :  { %s435_s7 = scalar_lea.hbm %s2518_s1, %s977_s3 }
 0x220   :  { %s1638_s5 = scalar_lea.hbm %s435_s7, 16  ;;  %p1641_p5 = scmp.lt.u32.totalorder %s435_s7, %s2518_s1 }
 0x221   :  { %p1639_p4 = scmp.ne.s32.totalorder %s435_s7, %s1638_s5  ;;  %p1642_p6 = scmp.lt.u32.totalorder %s2001_s8, %s1638_s5 }
 0x222   :  { %p1644_p8 = scmp.lt.u32.totalorder %s1638_s5, %s435_s7 }
 0x223   :  { %p1643_p7 = por %p1642_p6, %p1641_p5 }
 0x225   :  { %p1645_p9 = por %p1644_p8, %p1643_p7 }
 0x227   :  { %p1646_p10 = pnand %p1645_p9, %p1639_p4 }
 0x229   :  { %1649 = shalt.err (!%p1646_p10)  }
 0x22a   :  { %s1650_s27 = scalar_lea.vmem %s2366_s22, 16  ;;  %p1655_p13 = scmp.lt.s32.totalorder %s2366_s22, %s1984_s21 }
 0x22b   :  { %p1651_p12 = scmp.ne.s32.totalorder %s2366_s22, %s1650_s27  ;;  %p1656_p0 = scmp.lt.s32.totalorder %s2010_s12, %s1650_s27 }
 0x22d   :  { %p1657_p1 = por %p1656_p0, %p1655_p13 }
 0x22f   :  { %p1658_p2 = pnand %p1657_p1, %p1651_p12 }
 0x231   :  { %1661 = shalt.err (!%p1658_p2)  }
 0x232   :  { %448 = dma.hbm_to_vmem [thread:$0]  %s435_s7, 16, %s2366_s22, [#allocation2 + $0x18] }
 0x233   :  { %s1946_s6 = smov [#allocation5 + $0x19]   ;;  %s2394_s15 = sld [smem:[#allocation4 + $0x1a]] }
 0x234   :  { %s460_s0 = sshll.u32 %s1946_s6, 4  ;;  %s1947_s13 = smov [#allocation5 + $0x1a]   ;;  %s461_s0 = int_to_ptr.vmem [resolvable:$true] %s460_s0 }
 0x235   :  { %s475_s10 = sshll.u32 %s1947_s13, 4  ;;  %s2396_s14 = sld [smem:[#allocation4 + $0x1b]]  ;;  %s2399_s10 = int_to_ptr.vmem [resolvable:$true] %s475_s10 }
 0x236   :  { %s978_s16 = sshll.u32 %s2379_s28, 4 }
 0x237   :  { %s450_s23 = scalar_lea.hbm %s2518_s1, %s978_s16 }
 0x238   :  { %s1662_s18 = scalar_lea.hbm %s450_s23, 16  ;;  %p1665_p4 = scmp.lt.u32.totalorder %s450_s23, %s2518_s1 }
 0x239   :  { %p1663_p3 = scmp.ne.s32.totalorder %s450_s23, %s1662_s18  ;;  %p1666_p5 = scmp.lt.u32.totalorder %s2001_s8, %s1662_s18 }
 0x23a   :  { %p1668_p7 = scmp.lt.u32.totalorder %s1662_s18, %s450_s23 }
 0x23b   :  { %p1667_p6 = por %p1666_p5, %p1665_p4 }
 0x23d   :  { %p1669_p8 = por %p1668_p7, %p1667_p6 }
 0x23f   :  { %p1670_p9 = pnand %p1669_p8, %p1663_p3 }
 0x241   :  { %1673 = shalt.err (!%p1670_p9)  }
 0x242   :  { %s1674_s25 = scalar_lea.vmem %s461_s0, 16  ;;  %p1679_p12 = scmp.lt.s32.totalorder %s461_s0, %s1984_s21 }
 0x243   :  { %p1675_p10 = scmp.ne.s32.totalorder %s461_s0, %s1674_s25  ;;  %p1680_p13 = scmp.lt.s32.totalorder %s2010_s12, %s1674_s25 }
 0x245   :  { %p1681_p0 = por %p1680_p13, %p1679_p12 }
 0x247   :  { %p1682_p1 = pnand %p1681_p0, %p1675_p10 }
 0x249   :  { %1685 = shalt.err (!%p1682_p1)  }
 0x24a   :  { %463 = dma.hbm_to_vmem [thread:$0]  %s450_s23, 16, %s461_s0, [#allocation2 + $0x19] }
 0x24b   :  { %s979_s30 = sshll.u32 %s2394_s15, 4  ;;  %s1948_s26 = smov [#allocation5 + $0x1b]  }
 0x24c   :  { %s490_s24 = sshll.u32 %s1948_s26, 4  ;;  %s465_s29 = scalar_lea.hbm %s2518_s1, %s979_s30  ;;  %s2414_s24 = int_to_ptr.vmem [resolvable:$true] %s490_s24 }
 0x24d   :  { %s1686_s4 = scalar_lea.hbm %s465_s29, 16  ;;  %p1689_p3 = scmp.lt.u32.totalorder %s465_s29, %s2518_s1 }
 0x24e   :  { %p1687_p2 = scmp.ne.s32.totalorder %s465_s29, %s1686_s4  ;;  %p1690_p4 = scmp.lt.u32.totalorder %s2001_s8, %s1686_s4 }
 0x24f   :  { %p1692_p6 = scmp.lt.u32.totalorder %s1686_s4, %s465_s29 }
 0x250   :  { %p1691_p5 = por %p1690_p4, %p1689_p3 }
 0x252   :  { %p1693_p7 = por %p1692_p6, %p1691_p5 }
 0x254   :  { %p1694_p8 = pnand %p1693_p7, %p1687_p2 }
 0x256   :  { %1697 = shalt.err (!%p1694_p8)  }
 0x257   :  { %s1698_s9 = scalar_lea.vmem %s2399_s10, 16  ;;  %p1703_p10 = scmp.lt.s32.totalorder %s2399_s10, %s1984_s21 }
 0x258   :  { %p1699_p9 = scmp.ne.s32.totalorder %s2399_s10, %s1698_s9  ;;  %p1704_p12 = scmp.lt.s32.totalorder %s2010_s12, %s1698_s9 }
 0x25a   :  { %p1705_p13 = por %p1704_p12, %p1703_p10 }
 0x25c   :  { %p1706_p0 = pnand %p1705_p13, %p1699_p9 }
 0x25e   :  { %1709 = shalt.err (!%p1706_p0)  }
 0x25f   :  { %478 = dma.hbm_to_vmem [thread:$0]  %s465_s29, 16, %s2399_s10, [#allocation2 + $0x1a] }
 0x260   :  { %s980_s11 = sshll.u32 %s2396_s14, 4  ;;  %s2427_s27 = sld [smem:[#allocation4 + $0x1c]] }
 0x261   :  { %s480_s15 = scalar_lea.hbm %s2518_s1, %s980_s11 }
 0x262   :  { %s1710_s13 = scalar_lea.hbm %s480_s15, 16  ;;  %p1713_p2 = scmp.lt.u32.totalorder %s480_s15, %s2518_s1 }
 0x263   :  { %p1711_p1 = scmp.ne.s32.totalorder %s480_s15, %s1710_s13  ;;  %p1714_p3 = scmp.lt.u32.totalorder %s2001_s8, %s1710_s13 }
 0x264   :  { %p1716_p5 = scmp.lt.u32.totalorder %s1710_s13, %s480_s15 }
 0x265   :  { %p1715_p4 = por %p1714_p3, %p1713_p2 }
 0x267   :  { %p1717_p6 = por %p1716_p5, %p1715_p4 }
 0x269   :  { %p1718_p7 = pnand %p1717_p6, %p1711_p1 }
 0x26b   :  { %1721 = shalt.err (!%p1718_p7)  }
 0x26c   :  { %s1722_s10 = scalar_lea.vmem %s2414_s24, 16  ;;  %p1727_p9 = scmp.lt.s32.totalorder %s2414_s24, %s1984_s21 }
 0x26d   :  { %p1723_p8 = scmp.ne.s32.totalorder %s2414_s24, %s1722_s10  ;;  %p1728_p10 = scmp.lt.s32.totalorder %s2010_s12, %s1722_s10 }
 0x26f   :  { %p1729_p12 = por %p1728_p10, %p1727_p9 }
 0x271   :  { %p1730_p13 = pnand %p1729_p12, %p1723_p8 }
 0x273   :  { %1733 = shalt.err (!%p1730_p13)  }
 0x274   :  { %493 = dma.hbm_to_vmem [thread:$0]  %s480_s15, 16, %s2414_s24, [#allocation2 + $0x1b] }
 0x275   :  { %s1949_s14 = smov [#allocation5 + $0x1c]   ;;  %s2442_s23 = sld [smem:[#allocation4 + $0x1d]] }
 0x276   :  { %s505_s17 = sshll.u32 %s1949_s14, 4  ;;  %s1950_s18 = smov [#allocation5 + $0x1d]   ;;  %s506_s17 = int_to_ptr.vmem [resolvable:$true] %s505_s17 }
 0x277   :  { %s520_s19 = sshll.u32 %s1950_s18, 4  ;;  %s2444_s22 = sld [smem:[#allocation4 + $0x1e]]  ;;  %s2447_s19 = int_to_ptr.vmem [resolvable:$true] %s520_s19 }
 0x278   :  { %s981_s25 = sshll.u32 %s2427_s27, 4 }
 0x279   :  { %s495_s3 = scalar_lea.hbm %s2518_s1, %s981_s25 }
 0x27a   :  { %s1734_s28 = scalar_lea.hbm %s495_s3, 16  ;;  %p1737_p1 = scmp.lt.u32.totalorder %s495_s3, %s2518_s1 }
 0x27b   :  { %p1735_p0 = scmp.ne.s32.totalorder %s495_s3, %s1734_s28  ;;  %p1738_p2 = scmp.lt.u32.totalorder %s2001_s8, %s1734_s28 }
 0x27c   :  { %p1740_p4 = scmp.lt.u32.totalorder %s1734_s28, %s495_s3 }
 0x27d   :  { %p1739_p3 = por %p1738_p2, %p1737_p1 }
 0x27f   :  { %p1741_p5 = por %p1740_p4, %p1739_p3 }
 0x281   :  { %p1742_p6 = pnand %p1741_p5, %p1735_p0 }
 0x283   :  { %1745 = shalt.err (!%p1742_p6)  }
 0x284   :  { %s1746_s4 = scalar_lea.vmem %s506_s17, 16  ;;  %p1751_p8 = scmp.lt.s32.totalorder %s506_s17, %s1984_s21 }
 0x285   :  { %p1747_p7 = scmp.ne.s32.totalorder %s506_s17, %s1746_s4  ;;  %p1752_p9 = scmp.lt.s32.totalorder %s2010_s12, %s1746_s4 }
 0x287   :  { %p1753_p10 = por %p1752_p9, %p1751_p8 }
 0x289   :  { %p1754_p12 = pnand %p1753_p10, %p1747_p7 }
 0x28b   :  { %1757 = shalt.err (!%p1754_p12)  }
 0x28c   :  { %508 = dma.hbm_to_vmem [thread:$0]  %s495_s3, 16, %s506_s17, [#allocation2 + $0x1c] }
 0x28d   :  { %s982_s7 = sshll.u32 %s2442_s23, 4  ;;  %s1951_s5 = smov [#allocation5 + $0x1e]  }
 0x28e   :  { %s535_s9 = sshll.u32 %s1951_s5, 4  ;;  %s510_s6 = scalar_lea.hbm %s2518_s1, %s982_s7  ;;  %s2462_s9 = int_to_ptr.vmem [resolvable:$true] %s535_s9 }
 0x28f   :  { %s1758_s0 = scalar_lea.hbm %s510_s6, 16  ;;  %p1761_p0 = scmp.lt.u32.totalorder %s510_s6, %s2518_s1 }
 0x290   :  { %p1759_p13 = scmp.ne.s32.totalorder %s510_s6, %s1758_s0  ;;  %p1762_p1 = scmp.lt.u32.totalorder %s2001_s8, %s1758_s0 }
 0x291   :  { %p1764_p3 = scmp.lt.u32.totalorder %s1758_s0, %s510_s6 }
 0x292   :  { %p1763_p2 = por %p1762_p1, %p1761_p0 }
 0x294   :  { %p1765_p4 = por %p1764_p3, %p1763_p2 }
 0x296   :  { %p1766_p5 = pnand %p1765_p4, %p1759_p13 }
 0x298   :  { %1769 = shalt.err (!%p1766_p5)  }
 0x299   :  { %s1770_s16 = scalar_lea.vmem %s2447_s19, 16  ;;  %p1775_p7 = scmp.lt.s32.totalorder %s2447_s19, %s1984_s21 }
 0x29a   :  { %p1771_p6 = scmp.ne.s32.totalorder %s2447_s19, %s1770_s16  ;;  %p1776_p8 = scmp.lt.s32.totalorder %s2010_s12, %s1770_s16 }
 0x29c   :  { %p1777_p9 = por %p1776_p8, %p1775_p7 }
 0x29e   :  { %p1778_p10 = pnand %p1777_p9, %p1771_p6 }
 0x2a0   :  { %1781 = shalt.err (!%p1778_p10)  }
 0x2a1   :  { %523 = dma.hbm_to_vmem [thread:$0]  %s510_s6, 16, %s2447_s19, [#allocation2 + $0x1d] }
 0x2a2   :  { %s983_s20 = sshll.u32 %s2444_s22, 4  ;;  %s952_s10 = sld [smem:[#allocation4 + $0x1f]] }
 0x2a3   :  { %s525_s23 = scalar_lea.hbm %s2518_s1, %s983_s20 }
 0x2a4   :  { %s1782_s18 = scalar_lea.hbm %s525_s23, 16  ;;  %p1785_p13 = scmp.lt.u32.totalorder %s525_s23, %s2518_s1 }
 0x2a5   :  { %p1783_p12 = scmp.ne.s32.totalorder %s525_s23, %s1782_s18  ;;  %p1786_p0 = scmp.lt.u32.totalorder %s2001_s8, %s1782_s18 }
 0x2a6   :  { %p1788_p2 = scmp.lt.u32.totalorder %s1782_s18, %s525_s23 }
 0x2a7   :  { %p1787_p1 = por %p1786_p0, %p1785_p13 }
 0x2a9   :  { %p1789_p3 = por %p1788_p2, %p1787_p1 }
 0x2ab   :  { %p1790_p4 = pnand %p1789_p3, %p1783_p12 }
 0x2ad   :  { %1793 = shalt.err (!%p1790_p4)  }
 0x2ae   :  { %s1794_s19 = scalar_lea.vmem %s2462_s9, 16  ;;  %p1799_p6 = scmp.lt.s32.totalorder %s2462_s9, %s1984_s21 }
 0x2af   :  { %p1795_p5 = scmp.ne.s32.totalorder %s2462_s9, %s1794_s19  ;;  %p1800_p7 = scmp.lt.s32.totalorder %s2010_s12, %s1794_s19 }
 0x2b1   :  { %p1801_p8 = por %p1800_p7, %p1799_p6 }
 0x2b3   :  { %p1802_p9 = pnand %p1801_p8, %p1795_p5 }
 0x2b5   :  { %1805 = shalt.err (!%p1802_p9)  }
 0x2b6   :  { %538 = dma.hbm_to_vmem [thread:$0]  %s525_s23, 16, %s2462_s9, [#allocation2 + $0x1e] }
 0x2b7   :  { %s1952_s22 = smov [#allocation5 + $0x1f]   ;;  %s984_s3 = sshll.u32 %s952_s10, 4 }
 0x2b8   :  { %s550_s26 = sshll.u32 %s1952_s22, 4  ;;  %s540_s24 = scalar_lea.hbm %s2518_s1, %s984_s3  ;;  %s551_s26 = int_to_ptr.vmem [resolvable:$true] %s550_s26 }
 0x2b9   :  { %s1806_s4 = scalar_lea.hbm %s540_s24, 16  ;;  %p1809_p12 = scmp.lt.u32.totalorder %s540_s24, %s2518_s1 }
 0x2ba   :  { %p1807_p10 = scmp.ne.s32.totalorder %s540_s24, %s1806_s4  ;;  %p1810_p13 = scmp.lt.u32.totalorder %s2001_s8, %s1806_s4 }
 0x2bb   :  { %p1812_p1 = scmp.lt.u32.totalorder %s1806_s4, %s540_s24 }
 0x2bc   :  { %p1811_p0 = por %p1810_p13, %p1809_p12 }
 0x2be   :  { %p1813_p2 = por %p1812_p1, %p1811_p0 }
 0x2c0   :  { %p1814_p3 = pnand %p1813_p2, %p1807_p10 }
 0x2c2   :  { %1817 = shalt.err (!%p1814_p3)  }
 0x2c3   :  { %s1818_s9 = scalar_lea.vmem %s551_s26, 16  ;;  %p1823_p5 = scmp.lt.s32.totalorder %s551_s26, %s1984_s21 }
 0x2c4   :  { %p1819_p4 = scmp.ne.s32.totalorder %s551_s26, %s1818_s9  ;;  %p1824_p6 = scmp.lt.s32.totalorder %s2010_s12, %s1818_s9 }
 0x2c6   :  { %p1825_p7 = por %p1824_p6, %p1823_p5 }
 0x2c8   :  { %p1826_p8 = pnand %p1825_p7, %p1819_p4 }
 0x2ca   :  { %1829 = shalt.err (!%p1826_p8)  }
 0x2cb   :  { %553 = dma.hbm_to_vmem [thread:$0]  %s540_s24, 16, %s551_s26, [#allocation2 + $0x1f] }
 0x2cc   :  { %1854 = dma.done.wait [#allocation2], 16 }
 0x2cd   :  { %1855 = vsyncadd [#allocation2], 4294967280 }
 0x2ce   :  { %1856 = dma.done.wait [#allocation2 + $0x1], 16 }
 0x2cf   :  { %1857 = vsyncadd [#allocation2 + $0x1], 4294967280 }
 0x2d0   :  { %1858 = dma.done.wait [#allocation2 + $0x2], 16 }
 0x2d1   :  { %1859 = vsyncadd [#allocation2 + $0x2], 4294967280 }
 0x2d2   :  { %1860 = dma.done.wait [#allocation2 + $0x3], 16 }
 0x2d3   :  { %1861 = vsyncadd [#allocation2 + $0x3], 4294967280 }
 0x2d4   :  { %1862 = dma.done.wait [#allocation2 + $0x4], 16 }
 0x2d5   :  { %1863 = vsyncadd [#allocation2 + $0x4], 4294967280 }
 0x2d6   :  { %1864 = dma.done.wait [#allocation2 + $0x5], 16 }
 0x2d7   :  { %1865 = vsyncadd [#allocation2 + $0x5], 4294967280 }
 0x2d8   :  { %1866 = dma.done.wait [#allocation2 + $0x6], 16 }
 0x2d9   :  { %1867 = vsyncadd [#allocation2 + $0x6], 4294967280 }
 0x2da   :  { %1868 = dma.done.wait [#allocation2 + $0x7], 16 }
 0x2db   :  { %1869 = vsyncadd [#allocation2 + $0x7], 4294967280 }
 0x2dc   :  { %1870 = dma.done.wait [#allocation2 + $0x8], 16 }
 0x2dd   :  { %1871 = vsyncadd [#allocation2 + $0x8], 4294967280 }
 0x2de   :  { %1872 = dma.done.wait [#allocation2 + $0x9], 16 }
 0x2df   :  { %1873 = vsyncadd [#allocation2 + $0x9], 4294967280 }
 0x2e0   :  { %1874 = dma.done.wait [#allocation2 + $0xa], 16 }
 0x2e1   :  { %1875 = vsyncadd [#allocation2 + $0xa], 4294967280 }
 0x2e2   :  { %1876 = dma.done.wait [#allocation2 + $0xb], 16 }
 0x2e3   :  { %1877 = vsyncadd [#allocation2 + $0xb], 4294967280 }
 0x2e4   :  { %1878 = dma.done.wait [#allocation2 + $0xc], 16 }
 0x2e5   :  { %1879 = vsyncadd [#allocation2 + $0xc], 4294967280 }
 0x2e6   :  { %1880 = dma.done.wait [#allocation2 + $0xd], 16 }
 0x2e7   :  { %1881 = vsyncadd [#allocation2 + $0xd], 4294967280 }
 0x2e8   :  { %1882 = dma.done.wait [#allocation2 + $0xe], 16 }
 0x2e9   :  { %1883 = vsyncadd [#allocation2 + $0xe], 4294967280 }
 0x2ea   :  { %1884 = dma.done.wait [#allocation2 + $0xf], 16 }
 0x2eb   :  { %1885 = vsyncadd [#allocation2 + $0xf], 4294967280 }
 0x2ec   :  { %1886 = dma.done.wait [#allocation2 + $0x10], 16 }
 0x2ed   :  { %1887 = vsyncadd [#allocation2 + $0x10], 4294967280 }
 0x2ee   :  { %1888 = dma.done.wait [#allocation2 + $0x11], 16 }
 0x2ef   :  { %1889 = vsyncadd [#allocation2 + $0x11], 4294967280 }
 0x2f0   :  { %1890 = dma.done.wait [#allocation2 + $0x12], 16 }
 0x2f1   :  { %1891 = vsyncadd [#allocation2 + $0x12], 4294967280 }
 0x2f2   :  { %1892 = dma.done.wait [#allocation2 + $0x13], 16 }
 0x2f3   :  { %1893 = vsyncadd [#allocation2 + $0x13], 4294967280 }
 0x2f4   :  { %1894 = dma.done.wait [#allocation2 + $0x14], 16 }
 0x2f5   :  { %1895 = vsyncadd [#allocation2 + $0x14], 4294967280 }
 0x2f6   :  { %1896 = dma.done.wait [#allocation2 + $0x15], 16 }
 0x2f7   :  { %1897 = vsyncadd [#allocation2 + $0x15], 4294967280 }
 0x2f8   :  { %1898 = dma.done.wait [#allocation2 + $0x16], 16 }
 0x2f9   :  { %1899 = vsyncadd [#allocation2 + $0x16], 4294967280 }
 0x2fa   :  { %1900 = dma.done.wait [#allocation2 + $0x17], 16 }
 0x2fb   :  { %1901 = vsyncadd [#allocation2 + $0x17], 4294967280 }
 0x2fc   :  { %1902 = dma.done.wait [#allocation2 + $0x18], 16 }
 0x2fd   :  { %1903 = vsyncadd [#allocation2 + $0x18], 4294967280 }
 0x2fe   :  { %1904 = dma.done.wait [#allocation2 + $0x19], 16 }
 0x2ff   :  { %1905 = vsyncadd [#allocation2 + $0x19], 4294967280 }
 0x300   :  { %1906 = dma.done.wait [#allocation2 + $0x1a], 16 }
 0x301   :  { %1907 = vsyncadd [#allocation2 + $0x1a], 4294967280 }
 0x302   :  { %1908 = dma.done.wait [#allocation2 + $0x1b], 16 }
 0x303   :  { %1909 = vsyncadd [#allocation2 + $0x1b], 4294967280 }
 0x304   :  { %1910 = dma.done.wait [#allocation2 + $0x1c], 16 }
 0x305   :  { %1911 = vsyncadd [#allocation2 + $0x1c], 4294967280 }
 0x306   :  { %1912 = dma.done.wait [#allocation2 + $0x1d], 16 }
 0x307   :  { %1913 = vsyncadd [#allocation2 + $0x1d], 4294967280 }
 0x308   :  { %1914 = dma.done.wait [#allocation2 + $0x1e], 16 }
 0x309   :  { %1915 = vsyncadd [#allocation2 + $0x1e], 4294967280 }
 0x30a   :  { %1916 = dma.done.wait [#allocation2 + $0x1f], 16 }
 0x30b   :  { %1917 = vsyncadd [#allocation2 + $0x1f], 4294967280  ;;  %p1831_p9 = scmp.ne.s32.totalorder %s1984_s21, %s2010_s12  ;;  %p1836_p10 = scmp.lt.s32.totalorder %s2010_s12, %s2010_s12 }
 0x30d   :  { %p1837_p12 = por %p1836_p10, %p1079_p11 }
 0x30f   :  { %p1838_p13 = pnand %p1837_p12, %p1831_p9 }
 0x311   :  { %1841 = shalt.err (!%p1838_p13)
}
 0x312   :  { %s1842_s11 = scalar_lea.hbm %s2519_s2, 512 }
 0x313   :  { %p1843_p0 = scmp.ne.s32.totalorder %s2519_s2, %s1842_s11  ;;  %p1846_p1 = scmp.lt.u32.totalorder %s1842_s11, %s2519_s2 }
 0x315   :  { %p1848_p2 = pnand %p1846_p1, %p1843_p0 }
 0x317   :  { %1851 = shalt.err (!%p1848_p2)
}
 0x318   :  { %s1953_s13 = smov 128   ;;  %s1954_s12 = smov 8  }
 0x319   :  { %630 = dma.vmem_to_hbm [thread:$0]  %s1984_s21, 512, %s2519_s2, [#allocation6], %s1953_s13, %s1953_s13, %s1954_s12  }
 0x31a   :  { %1918 = dma.done.wait [#allocation6], 512  }
 0x31b   :  { %1919 = vsyncadd [#allocation6], 4294966784 }
 0x31c   :  { %634 = vsyncpa [#allocation6], 1 }
 0x31d   :  { %635 = vsyncmov [#allocation2] }
 0x320   :  { %s636_s10 = vpop.sfrf %635 }
 0x321   :  { %p985_p11 = scmp.ne.s32.totalorder %s636_s10, 0 }
 0x323   :  { %640 = shalt.err (%p985_p11)  }
 0x324   :  { %642 = vsyncmov [#allocation2 + $0x1] }
 0x327   :  { %s643_s14 = vpop.sfrf %642 }
 0x328   :  { %p986_p3 = scmp.ne.s32.totalorder %s643_s14, 0 }
 0x32a   :  { %647 = shalt.err (%p986_p3)  }
 0x32b   :  { %649 = vsyncmov [#allocation2 + $0x2] }
 0x32e   :  { %s650_s17 = vpop.sfrf %649 }
 0x32f   :  { %p987_p4 = scmp.ne.s32.totalorder %s650_s17, 0 }
 0x331   :  { %654 = shalt.err (%p987_p4)  }
 0x332   :  { %656 = vsyncmov [#allocation2 + $0x3] }
 0x335   :  { %s657_s23 = vpop.sfrf %656 }
 0x336   :  { %p988_p5 = scmp.ne.s32.totalorder %s657_s23, 0 }
 0x338   :  { %661 = shalt.err (%p988_p5)  }
 0x339   :  { %663 = vsyncmov [#allocation2 + $0x4] }
 0x33c   :  { %s664_s2 = vpop.sfrf %663 }
 0x33d   :  { %p989_p6 = scmp.ne.s32.totalorder %s664_s2, 0 }
 0x33f   :  { %668 = shalt.err (%p989_p6)  }
 0x340   :  { %670 = vsyncmov [#allocation2 + $0x5] }
 0x343   :  { %s671_s21 = vpop.sfrf %670 }
 0x344   :  { %p990_p7 = scmp.ne.s32.totalorder %s671_s21, 0 }
 0x346   :  { %675 = shalt.err (%p990_p7)  }
 0x347   :  { %677 = vsyncmov [#allocation2 + $0x6] }
 0x34a   :  { %s678_s18 = vpop.sfrf %677 }
 0x34b   :  { %p991_p8 = scmp.ne.s32.totalorder %s678_s18, 0 }
 0x34d   :  { %682 = shalt.err (%p991_p8)  }
 0x34e   :  { %684 = vsyncmov [#allocation2 + $0x7] }
 0x351   :  { %s685_s25 = vpop.sfrf %684 }
 0x352   :  { %p992_p9 = scmp.ne.s32.totalorder %s685_s25, 0 }
 0x354   :  { %689 = shalt.err (%p992_p9)  }
 0x355   :  { %691 = vsyncmov [#allocation2 + $0x8] }
 0x358   :  { %s692_s30 = vpop.sfrf %691 }
 0x359   :  { %p993_p10 = scmp.ne.s32.totalorder %s692_s30, 0 }
 0x35b   :  { %696 = shalt.err (%p993_p10)  }
 0x35c   :  { %698 = vsyncmov [#allocation2 + $0x9] }
 0x35f   :  { %s699_s19 = vpop.sfrf %698 }
 0x360   :  { %p994_p12 = scmp.ne.s32.totalorder %s699_s19, 0 }
 0x362   :  { %703 = shalt.err (%p994_p12)  }
 0x363   :  { %705 = vsyncmov [#allocation2 + $0xa] }
 0x366   :  { %s706_s22 = vpop.sfrf %705 }
 0x367   :  { %p995_p13 = scmp.ne.s32.totalorder %s706_s22, 0 }
 0x369   :  { %710 = shalt.err (%p995_p13)  }
 0x36a   :  { %712 = vsyncmov [#allocation2 + $0xb] }
 0x36d   :  { %s713_s26 = vpop.sfrf %712 }
 0x36e   :  { %p996_p0 = scmp.ne.s32.totalorder %s713_s26, 0 }
 0x370   :  { %717 = shalt.err (%p996_p0)  }
 0x371   :  { %719 = vsyncmov [#allocation2 + $0xc] }
 0x374   :  { %s720_s3 = vpop.sfrf %719 }
 0x375   :  { %p997_p1 = scmp.ne.s32.totalorder %s720_s3, 0 }
 0x377   :  { %724 = shalt.err (%p997_p1)  }
 0x378   :  { %726 = vsyncmov [#allocation2 + $0xd] }
 0x37b   :  { %s727_s28 = vpop.sfrf %726 }
 0x37c   :  { %p998_p2 = scmp.ne.s32.totalorder %s727_s28, 0 }
 0x37e   :  { %731 = shalt.err (%p998_p2)  }
 0x37f   :  { %733 = vsyncmov [#allocation2 + $0xe] }
 0x382   :  { %s734_s29 = vpop.sfrf %733 }
 0x383   :  { %p999_p11 = scmp.ne.s32.totalorder %s734_s29, 0 }
 0x385   :  { %738 = shalt.err (%p999_p11)  }
 0x386   :  { %740 = vsyncmov [#allocation2 + $0xf] }
 0x389   :  { %s741_s24 = vpop.sfrf %740 }
 0x38a   :  { %p1000_p3 = scmp.ne.s32.totalorder %s741_s24, 0 }
 0x38c   :  { %745 = shalt.err (%p1000_p3)  }
 0x38d   :  { %747 = vsyncmov [#allocation2 + $0x10] }
 0x390   :  { %s748_s4 = vpop.sfrf %747 }
 0x391   :  { %p1001_p4 = scmp.ne.s32.totalorder %s748_s4, 0 }
 0x393   :  { %752 = shalt.err (%p1001_p4)  }
 0x394   :  { %754 = vsyncmov [#allocation2 + $0x11] }
 0x397   :  { %s755_s7 = vpop.sfrf %754 }
 0x398   :  { %p1002_p5 = scmp.ne.s32.totalorder %s755_s7, 0 }
 0x39a   :  { %759 = shalt.err (%p1002_p5)  }
 0x39b   :  { %761 = vsyncmov [#allocation2 + $0x12] }
 0x39e   :  { %s762_s5 = vpop.sfrf %761 }
 0x39f   :  { %p1003_p6 = scmp.ne.s32.totalorder %s762_s5, 0 }
 0x3a1   :  { %766 = shalt.err (%p1003_p6)  }
 0x3a2   :  { %768 = vsyncmov [#allocation2 + $0x13] }
 0x3a5   :  { %s769_s9 = vpop.sfrf %768 }
 0x3a6   :  { %p1004_p7 = scmp.ne.s32.totalorder %s769_s9, 0 }
 0x3a8   :  { %773 = shalt.err (%p1004_p7)  }
 0x3a9   :  { %775 = vsyncmov [#allocation2 + $0x14] }
 0x3ac   :  { %s776_s1 = vpop.sfrf %775 }
 0x3ad   :  { %p1005_p8 = scmp.ne.s32.totalorder %s776_s1, 0 }
 0x3af   :  { %780 = shalt.err (%p1005_p8)  }
 0x3b0   :  { %782 = vsyncmov [#allocation2 + $0x15] }
 0x3b3   :  { %s783_s8 = vpop.sfrf %782 }
 0x3b4   :  { %p1006_p9 = scmp.ne.s32.totalorder %s783_s8, 0 }
 0x3b6   :  { %787 = shalt.err (%p1006_p9)  }
 0x3b7   :  { %789 = vsyncmov [#allocation2 + $0x16] }
 0x3ba   :  { %s790_s11 = vpop.sfrf %789 }
 0x3bb   :  { %p1007_p10 = scmp.ne.s32.totalorder %s790_s11, 0 }
 0x3bd   :  { %794 = shalt.err (%p1007_p10)  }
 0x3be   :  { %796 = vsyncmov [#allocation2 + $0x17] }
 0x3c1   :  { %s797_s27 = vpop.sfrf %796 }
 0x3c2   :  { %p1008_p12 = scmp.ne.s32.totalorder %s797_s27, 0 }
 0x3c4   :  { %801 = shalt.err (%p1008_p12)  }
 0x3c5   :  { %803 = vsyncmov [#allocation2 + $0x18] }
 0x3c8   :  { %s804_s6 = vpop.sfrf %803 }
 0x3c9   :  { %p1009_p13 = scmp.ne.s32.totalorder %s804_s6, 0 }
 0x3cb   :  { %808 = shalt.err (%p1009_p13)  }
 0x3cc   :  { %810 = vsyncmov [#allocation2 + $0x19] }
 0x3cf   :  { %s811_s0 = vpop.sfrf %810 }
 0x3d0   :  { %p1010_p0 = scmp.ne.s32.totalorder %s811_s0, 0 }
 0x3d2   :  { %815 = shalt.err (%p1010_p0)  }
 0x3d3   :  { %817 = vsyncmov [#allocation2 + $0x1a] }
 0x3d6   :  { %s818_s15 = vpop.sfrf %817 }
 0x3d7   :  { %p1011_p1 = scmp.ne.s32.totalorder %s818_s15, 0 }
 0x3d9   :  { %822 = shalt.err (%p1011_p1)  }
 0x3da   :  { %824 = vsyncmov [#allocation2 + $0x1b] }
 0x3dd   :  { %s825_s13 = vpop.sfrf %824 }
 0x3de   :  { %p1012_p2 = scmp.ne.s32.totalorder %s825_s13, 0 }
 0x3e0   :  { %829 = shalt.err (%p1012_p2)  }
 0x3e1   :  { %831 = vsyncmov [#allocation2 + $0x1c] }
 0x3e4   :  { %s832_s12 = vpop.sfrf %831 }
 0x3e5   :  { %p1013_p11 = scmp.ne.s32.totalorder %s832_s12, 0 }
 0x3e7   :  { %836 = shalt.err (%p1013_p11)  }
 0x3e8   :  { %838 = vsyncmov [#allocation2 + $0x1d] }
 0x3eb   :  { %s839_s16 = vpop.sfrf %838 }
 0x3ec   :  { %p1014_p3 = scmp.ne.s32.totalorder %s839_s16, 0 }
 0x3ee   :  { %843 = shalt.err (%p1014_p3)  }
 0x3ef   :  { %845 = vsyncmov [#allocation2 + $0x1e] }
 0x3f2   :  { %s846_s20 = vpop.sfrf %845 }
 0x3f3   :  { %p1015_p4 = scmp.ne.s32.totalorder %s846_s20, 0 }
 0x3f5   :  { %850 = shalt.err (%p1015_p4)  }
 0x3f6   :  { %852 = vsyncmov [#allocation2 + $0x1f] }
 0x3f9   :  { %s853_s10 = vpop.sfrf %852 }
 0x3fa   :  { %p1016_p5 = scmp.ne.s32.totalorder %s853_s10, 0 }
 0x3fc   :  { %857 = shalt.err (%p1016_p5)  }

</bundles_post_ra>
